<compile_context>
chip_gen: v7x
topology: tpu7x:2x2x1
jax: 0.10.0
libtpu: 0.0.40
codegen_flags: <defaults>
</compile_context>

<pallas_src>
import jax
import jax.numpy as jnp
from jax.experimental import pallas as pl
from jax.experimental.pallas import tpu as pltpu

MIB = 1024 * 1024


def attend_kernel(a_ref, b_ref, w1_ref, b1_ref, w2_ref, b2_ref,
                  beta_ref, alpha_ref):
    bblk, La, E = a_ref.shape
    _, Lb, _ = b_ref.shape
    H = w2_ref.shape[1]

    a = a_ref[...]            # (bblk, La, E) bf16
    b = b_ref[...]            # (bblk, Lb, E) bf16
    w1 = w1_ref[...]          # (E, H) bf16
    w2 = w2_ref[...]          # (H, H) bf16
    b1 = b1_ref[...]          # (1, H) f32
    b2 = b2_ref[...]          # (1, H) f32

    def mlp(x2d):
        # (rows, E) bf16 -> (rows, H) bf16; f32 accumulate + f32 bias/ReLU.
        h = jnp.dot(x2d, w1, preferred_element_type=jnp.float32) + b1
        h = jnp.maximum(h, 0.0).astype(jnp.bfloat16)
        h = jnp.dot(h, w2, preferred_element_type=jnp.float32) + b2
        return jnp.maximum(h, 0.0).astype(jnp.bfloat16)

    # Shared MLP f(.) on A-rows and B-rows (two flattened matmuls, no concat).
    fa = mlp(a.reshape(bblk * La, E)).reshape(bblk, La, H)
    fb = mlp(b.reshape(bblk * Lb, E)).reshape(bblk, Lb, H)

    # --- beta = softmax(e, -1) @ B,  e[b,l,m] = <fa[b,l,:], fb[b,m,:]> ---
    e = jnp.einsum("bld,bmd->blm", fa, fb,
                   preferred_element_type=jnp.float32)         # (bblk, La, Lb)
    p = jnp.exp(e - jnp.max(e, axis=-1, keepdims=True))
    p = p * pl.reciprocal(jnp.sum(p, axis=-1, keepdims=True), approx=True)
    beta = jnp.einsum("blm,bme->ble", p.astype(jnp.bfloat16), b,
                      preferred_element_type=jnp.float32)       # (bblk, La, E)
    beta_ref[...] = beta.reshape(bblk, La * E)                  # lane-dense store

    # --- alpha = softmax(e^T, -1) @ A; e^T built on the (idle) MXU,
    #     no XLU transpose of e. ---
    et = jnp.einsum("bmd,bld->bml", fb, fa,
                    preferred_element_type=jnp.float32)         # (bblk, Lb, La)
    q = jnp.exp(et - jnp.max(et, axis=-1, keepdims=True))
    q = q * pl.reciprocal(jnp.sum(q, axis=-1, keepdims=True), approx=True)
    alpha = jnp.einsum("bml,ble->bme", q.astype(jnp.bfloat16), a,
                       preferred_element_type=jnp.float32)      # (bblk, Lb, E)
    alpha_ref[...] = alpha.reshape(bblk, Lb * E)                # lane-dense store


# ---------------------------------------------------------------------------
# VMEM planning (generation-aware)
# ---------------------------------------------------------------------------
def _round_up(x, m):
    return -(-x // m) * m


def _tile_bytes(rows, cols, itemsize):
    """VMEM footprint of a (rows, cols) tile with (sublane, lane) padding."""
    sub = 32 // itemsize            # 8 rows/vreg for f32, 16 for bf16
    return _round_up(rows, sub) * _round_up(cols, 128) * itemsize


def _per_example_bytes(La, Lb, E, H):
    pe = 0
    # double-buffered bf16 input blocks (last dim E lane-padded to 128)
    pe += 2 * (_tile_bytes(La, E, 2) + _tile_bytes(Lb, E, 2))
    # double-buffered lane-dense f32 output blocks (beta, alpha)
    pe += 2 * 4 * (_round_up(La * E, 128) + _round_up(Lb * E, 128))
    # MLP activations: f32 + bf16 copies per layer for A-rows and B-rows
    pe += (La + Lb) * (2 * _round_up(H, 128) * 4 + 2 * _round_up(H, 128) * 2)
    # score tensors: e/p f32 + p bf16 (Lb lane-padded); et/q f32 + q bf16
    pe += 2 * _tile_bytes(La, Lb, 4) + _tile_bytes(La, Lb, 2)
    pe += 2 * _tile_bytes(Lb, La, 4) + _tile_bytes(Lb, La, 2)
    # attention results before the lane-dense reshape + reshaped copies
    pe += _tile_bytes(La, E, 4) + _tile_bytes(Lb, E, 4)
    pe += 4 * (_round_up(La * E, 128) + _round_up(Lb * E, 128))
    return pe


def _weight_bytes(E, H):
    wb = _tile_bytes(E, H, 2) + _tile_bytes(H, H, 2) + 2 * _tile_bytes(1, H, 4)
    return 2 * wb   # the pipeline still double-buffers the resident weights


def _vmem_plan():
    """Return (vmem_limit_bytes, per-step block budget) for this TPU."""
    cap = None
    try:
        cap = int(pltpu.get_tpu_info().vmem_capacity_bytes)
    except Exception:
        cap = None
    if cap is None:
        try:
            kind = jax.devices()[0].device_kind.lower()
        except Exception:
            kind = ""
        cap = 64 * MIB if "7" in kind else 128 * MIB
    if cap <= 64 * MIB:
        # v7x: 64 MiB VMEM per TensorCore -> stay well clear of OOM/spill.
        return 48 * MIB, 24 * MIB
    # v5e / v6e: 128 MiB physical -> run fat blocks (mem-bound kernel).
    return 96 * MIB, 48 * MIB


def _pick_batch_block(batch, La, Lb, E, H, budget_bytes):
    """Largest legal batch block fitting the VMEM budget; prefer even grids."""
    per_ex = max(1, _per_example_bytes(La, Lb, E, H))
    avail = max(budget_bytes - _weight_bytes(E, H), per_ex)
    cap = max(1, avail // per_ex)
    # The 2-D output block puts bblk on the sublane axis: require a multiple of
    # 8 (f32 sublane) or the full batch.
    legal = [d for d in range(1, batch + 1)
             if batch % d == 0 and (d % 8 == 0 or d == batch)]
    ok = [d for d in legal if d <= cap] or [min(legal)]
    best = max(ok)
    # v7x megacore: prefer an even grid (2 TensorCores on the parallel axis),
    # but never shrink the block by more than 2x for it.
    even = [d for d in ok if (batch // d) % 2 == 0]
    if even and max(even) * 2 >= best:
        best = max(even)
    return best


# ---------------------------------------------------------------------------
# Wrapper
# ---------------------------------------------------------------------------
def attend(A, B, w1, b1, w2, b2):
    batch, La, E = A.shape
    _, Lb, _ = B.shape
    H = w2.shape[1]

    # Cast MXU operands to bf16 once, outside the kernel (halves input DMA).
    A_bf = A.astype(jnp.bfloat16)
    B_bf = B.astype(jnp.bfloat16)
    w1_bf = w1.astype(jnp.bfloat16)
    w2_bf = w2.astype(jnp.bfloat16)
    # biases kept 2D (1, H) f32 so they map cleanly onto (sublane, lane) tiles
    b1_2d = b1.reshape(1, H).astype(jnp.float32)
    b2_2d = b2.reshape(1, H).astype(jnp.float32)

    vmem_limit, block_budget = _vmem_plan()
    bblk = _pick_batch_block(batch, La, Lb, E, H, block_budget)
    grid = (batch // bblk,)

    # Lane-dense 2-D output slabs; reshaped back to (batch, L, E) below.
    out_shape = (
        jax.ShapeDtypeStruct((batch, La * E), jnp.float32),   # beta
        jax.ShapeDtypeStruct((batch, Lb * E), jnp.float32),   # alpha
    )

    grid_spec = pltpu.PrefetchScalarGridSpec(
        num_scalar_prefetch=0,
        grid=grid,
        in_specs=[
            pl.BlockSpec((bblk, La, E), lambda i: (i, 0, 0)),   # A (bf16)
            pl.BlockSpec((bblk, Lb, E), lambda i: (i, 0, 0)),   # B (bf16)
            pl.BlockSpec((E, H), lambda i: (0, 0)),             # w1 (resident)
            pl.BlockSpec((1, H), lambda i: (0, 0)),             # b1 (resident)
            pl.BlockSpec((H, H), lambda i: (0, 0)),             # w2 (resident)
            pl.BlockSpec((1, H), lambda i: (0, 0)),             # b2 (resident)
        ],
        out_specs=[
            pl.BlockSpec((bblk, La * E), lambda i: (i, 0)),     # beta slab
            pl.BlockSpec((bblk, Lb * E), lambda i: (i, 0)),     # alpha slab
        ],
    )

    beta2d, alpha2d = pl.pallas_call(
        attend_kernel,
        out_shape=out_shape,
        grid_spec=grid_spec,
        compiler_params=pltpu.CompilerParams(
            dimension_semantics=("parallel",),
            vmem_limit_bytes=vmem_limit,
        ),
    )(A_bf, B_bf, w1_bf, b1_2d, w2_bf, b2_2d)

    return beta2d.reshape(batch, La, E), alpha2d.reshape(batch, Lb, E)


def attend_ref(A, B, w1, b1, w2, b2):
    def f(x):
        h = jnp.maximum(x @ w1 + b1, 0.0)
        return jnp.maximum(h @ w2 + b2, 0.0)
    fa = f(A)                                              # (bt, La, H)
    fb = f(B)                                              # (bt, Lb, H)
    e = jnp.einsum("bld,bmd->blm", fa, fb)                 # (bt, La, Lb)
    beta = jnp.einsum("blm,bme->ble", jax.nn.softmax(e, axis=-1), B)
    alpha = jnp.einsum("bml,ble->bme",
                       jax.nn.softmax(jnp.swapaxes(e, 1, 2), axis=-1), A)
    return beta, alpha


if __name__ == "__main__":
    # Small shapes consistent with Attend(num_input=embed, num_hiddens).
    # batch=16 so a bblk=8 (sublane-aligned) block yields an even 2-step grid;
    # seq lengths are multiples of 8 so in-kernel flattens stay tile-aligned.
    batch, La, Lb, embed, hidden = 16, 8, 16, 32, 32

    key = jax.random.PRNGKey(0)
    k_a, k_b, k_w1, k_b1, k_w2, k_b2 = jax.random.split(key, 6)

    A = jax.random.normal(k_a, (batch, La, embed), dtype=jnp.float32)
    B = jax.random.normal(k_b, (batch, Lb, embed), dtype=jnp.float32)

    # Deterministic Linear params (f: embed -> hidden -> hidden)
    w1 = jax.random.normal(k_w1, (embed, hidden), dtype=jnp.float32) * 0.1
    b1 = jax.random.normal(k_b1, (hidden,), dtype=jnp.float32) * 0.1
    w2 = jax.random.normal(k_w2, (hidden, hidden), dtype=jnp.float32) * 0.1
    b2 = jax.random.normal(k_b2, (hidden,), dtype=jnp.float32) * 0.1

    beta, alpha = attend(A, B, w1, b1, w2, b2)
    jax.block_until_ready((beta, alpha))

    beta_r, alpha_r = attend_ref(A, B, w1, b1, w2, b2)
    assert beta.shape == (batch, La, embed)
    assert alpha.shape == (batch, Lb, embed)
    # bf16 MXU operands (f32 accumulation) + approx softmax reciprocal
    # -> loosened tolerance vs the f32 reference.
    assert jnp.allclose(beta, beta_r, atol=3e-2, rtol=3e-2), (
        float(jnp.max(jnp.abs(beta - beta_r))))
    assert jnp.allclose(alpha, alpha_r, atol=3e-2, rtol=3e-2), (
        float(jnp.max(jnp.abs(alpha - alpha_r))))

    print("KERNEL_OK")
</pallas_src>

<mosaic_0001>
module attributes {stable_mosaic.version = 11 : i64} {
  func.func @attend_kernel(%arg0: i32, %arg1: memref<8x8x32xbf16, #tpu.memory_space<vmem>>, %arg2: memref<8x16x32xbf16, #tpu.memory_space<vmem>>, %arg3: memref<32x32xbf16, #tpu.memory_space<vmem>>, %arg4: memref<1x32xf32, #tpu.memory_space<vmem>>, %arg5: memref<32x32xbf16, #tpu.memory_space<vmem>>, %arg6: memref<1x32xf32, #tpu.memory_space<vmem>>, %arg7: memref<8x256xf32, #tpu.memory_space<vmem>>, %arg8: memref<8x512xf32, #tpu.memory_space<vmem>>) attributes {dimension_semantics = [#tpu.dimension_semantics<parallel>], iteration_bounds = array<i64: 2>, scalar_prefetch = 0 : i64, scratch_operands = 0 : i64, tpu.core_type = #tpu.core_type<tc>, window_params = [{transform_indices = @transform_0, window_bounds = array<i64: 8, 8, 32>}, {transform_indices = @transform_1, window_bounds = array<i64: 8, 16, 32>}, {pipeline_mode = #tpu.pipeline_mode<synchronous>, transform_indices = @transform_2, window_bounds = array<i64: 32, 32>}, {pipeline_mode = #tpu.pipeline_mode<synchronous>, transform_indices = @transform_3, window_bounds = array<i64: 1, 32>}, {pipeline_mode = #tpu.pipeline_mode<synchronous>, transform_indices = @transform_4, window_bounds = array<i64: 32, 32>}, {pipeline_mode = #tpu.pipeline_mode<synchronous>, transform_indices = @transform_5, window_bounds = array<i64: 1, 32>}, {transform_indices = @transform_6, window_bounds = array<i64: 8, 256>}, {transform_indices = @transform_7, window_bounds = array<i64: 8, 512>}]} {
    %c0 = arith.constant 0 : index
    %c0_0 = arith.constant 0 : index
    %c0_1 = arith.constant 0 : index
    %0 = vector.load %arg1[%c0, %c0_0, %c0_1] : memref<8x8x32xbf16, #tpu.memory_space<vmem>>, vector<8x8x32xbf16>
    %c0_2 = arith.constant 0 : index
    %c0_3 = arith.constant 0 : index
    %c0_4 = arith.constant 0 : index
    %1 = vector.load %arg2[%c0_2, %c0_3, %c0_4] : memref<8x16x32xbf16, #tpu.memory_space<vmem>>, vector<8x16x32xbf16>
    %c0_5 = arith.constant 0 : index
    %c0_6 = arith.constant 0 : index
    %2 = vector.load %arg3[%c0_5, %c0_6] : memref<32x32xbf16, #tpu.memory_space<vmem>>, vector<32x32xbf16>
    %c0_7 = arith.constant 0 : index
    %c0_8 = arith.constant 0 : index
    %3 = vector.load %arg5[%c0_7, %c0_8] : memref<32x32xbf16, #tpu.memory_space<vmem>>, vector<32x32xbf16>
    %c0_9 = arith.constant 0 : index
    %c0_10 = arith.constant 0 : index
    %4 = vector.load %arg4[%c0_9, %c0_10] : memref<1x32xf32, #tpu.memory_space<vmem>>, vector<1x32xf32>
    %c0_11 = arith.constant 0 : index
    %c0_12 = arith.constant 0 : index
    %5 = vector.load %arg6[%c0_11, %c0_12] : memref<1x32xf32, #tpu.memory_space<vmem>>, vector<1x32xf32>
    %6 = vector.shape_cast %0 : vector<8x8x32xbf16> to vector<64x32xbf16>
    %cst = arith.constant dense<0.000000e+00> : vector<64x32xf32>
    %7 = tpu.matmul %6, %2, %cst {dimension_numbers = #tpu.dot_dimension_numbers<[1], [0], [0], [1], [0, 0, 1, 1], [], []>} : vector<64x32xbf16>, vector<32x32xbf16>, vector<64x32xf32> -> vector<64x32xf32>
    %8 = vector.broadcast %4 : vector<1x32xf32> to vector<64x32xf32>
    %9 = arith.addf %7, %8 : vector<64x32xf32>
    %cst_13 = arith.constant 0.000000e+00 : f32
    %10 = vector.broadcast %cst_13 : f32 to vector<64x32xf32>
    %11 = arith.maximumf %9, %10 : vector<64x32xf32>
    %12 = arith.truncf %11 : vector<64x32xf32> to vector<64x32xbf16>
    %cst_14 = arith.constant dense<0.000000e+00> : vector<64x32xf32>
    %13 = tpu.matmul %12, %3, %cst_14 {dimension_numbers = #tpu.dot_dimension_numbers<[1], [0], [0], [1], [0, 0, 1, 1], [], []>} : vector<64x32xbf16>, vector<32x32xbf16>, vector<64x32xf32> -> vector<64x32xf32>
    %14 = vector.broadcast %5 : vector<1x32xf32> to vector<64x32xf32>
    %15 = arith.addf %13, %14 : vector<64x32xf32>
    %cst_15 = arith.constant 0.000000e+00 : f32
    %16 = vector.broadcast %cst_15 : f32 to vector<64x32xf32>
    %17 = arith.maximumf %15, %16 : vector<64x32xf32>
    %18 = arith.truncf %17 : vector<64x32xf32> to vector<64x32xbf16>
    %19 = vector.shape_cast %18 : vector<64x32xbf16> to vector<8x8x32xbf16>
    %20 = vector.shape_cast %1 : vector<8x16x32xbf16> to vector<128x32xbf16>
    %cst_16 = arith.constant dense<0.000000e+00> : vector<128x32xf32>
    %21 = tpu.matmul %20, %2, %cst_16 {dimension_numbers = #tpu.dot_dimension_numbers<[1], [0], [0], [1], [0, 0, 1, 1], [], []>} : vector<128x32xbf16>, vector<32x32xbf16>, vector<128x32xf32> -> vector<128x32xf32>
    %22 = vector.broadcast %4 : vector<1x32xf32> to vector<128x32xf32>
    %23 = arith.addf %21, %22 : vector<128x32xf32>
    %cst_17 = arith.constant 0.000000e+00 : f32
    %24 = vector.broadcast %cst_17 : f32 to vector<128x32xf32>
    %25 = arith.maximumf %23, %24 : vector<128x32xf32>
    %26 = arith.truncf %25 : vector<128x32xf32> to vector<128x32xbf16>
    %cst_18 = arith.constant dense<0.000000e+00> : vector<128x32xf32>
    %27 = tpu.matmul %26, %3, %cst_18 {dimension_numbers = #tpu.dot_dimension_numbers<[1], [0], [0], [1], [0, 0, 1, 1], [], []>} : vector<128x32xbf16>, vector<32x32xbf16>, vector<128x32xf32> -> vector<128x32xf32>
    %28 = vector.broadcast %5 : vector<1x32xf32> to vector<128x32xf32>
    %29 = arith.addf %27, %28 : vector<128x32xf32>
    %cst_19 = arith.constant 0.000000e+00 : f32
    %30 = vector.broadcast %cst_19 : f32 to vector<128x32xf32>
    %31 = arith.maximumf %29, %30 : vector<128x32xf32>
    %32 = arith.truncf %31 : vector<128x32xf32> to vector<128x32xbf16>
    %33 = vector.shape_cast %32 : vector<128x32xbf16> to vector<8x16x32xbf16>
    "tpu.trace_start"() <{level = 10 : i32, message = "bld,bmd->blm"}> : () -> ()
    %cst_20 = arith.constant dense<0.000000e+00> : vector<8x8x16xf32>
    %34 = tpu.matmul %19, %33, %cst_20 {dimension_numbers = #tpu.dot_dimension_numbers<[2], [2], [1], [1], [0, 0, 0, 1, 1, 1], [0], [0]>} : vector<8x8x32xbf16>, vector<8x16x32xbf16>, vector<8x8x16xf32> -> vector<8x8x16xf32>
    "tpu.trace_stop"() : () -> ()
    %cst_21 = arith.constant dense<0xFF800000> : vector<8x8xf32>
    %35 = vector.multi_reduction <maximumf>, %34, %cst_21 [2] : vector<8x8x16xf32> to vector<8x8xf32>
    %36 = vector.shape_cast %35 : vector<8x8xf32> to vector<8x8x1xf32>
    %37 = vector.broadcast %36 : vector<8x8x1xf32> to vector<8x8x16xf32>
    %38 = arith.subf %34, %37 : vector<8x8x16xf32>
    %39 = math.exp %38 : vector<8x8x16xf32>
    %cst_22 = arith.constant dense<0.000000e+00> : vector<8x8xf32>
    %40 = vector.multi_reduction <add>, %39, %cst_22 [2] : vector<8x8x16xf32> to vector<8x8xf32>
    %41 = vector.shape_cast %40 : vector<8x8xf32> to vector<8x8x1xf32>
    %42 = tpu.reciprocal %41 {approx = true} : vector<8x8x1xf32> -> vector<8x8x1xf32>
    %43 = vector.broadcast %42 : vector<8x8x1xf32> to vector<8x8x16xf32>
    %44 = arith.mulf %39, %43 : vector<8x8x16xf32>
    %45 = arith.truncf %44 : vector<8x8x16xf32> to vector<8x8x16xbf16>
    "tpu.trace_start"() <{level = 10 : i32, message = "blm,bme->ble"}> : () -> ()
    %cst_23 = arith.constant dense<0.000000e+00> : vector<8x8x32xf32>
    %46 = tpu.matmul %45, %1, %cst_23 {dimension_numbers = #tpu.dot_dimension_numbers<[2], [1], [1], [2], [0, 0, 0, 1, 1, 2], [0], [0]>} : vector<8x8x16xbf16>, vector<8x16x32xbf16>, vector<8x8x32xf32> -> vector<8x8x32xf32>
    "tpu.trace_stop"() : () -> ()
    %47 = vector.shape_cast %46 : vector<8x8x32xf32> to vector<8x256xf32>
    %c0_24 = arith.constant 0 : index
    %c0_25 = arith.constant 0 : index
    %48 = vector.load %arg7[%c0_24, %c0_25] : memref<8x256xf32, #tpu.memory_space<vmem>>, vector<8x256xf32>
    tpu.vector_store %arg7[%c0_24, %c0_25], %47 {strides = array<i32>} : memref<8x256xf32, #tpu.memory_space<vmem>>, vector<8x256xf32>,
    "tpu.trace_start"() <{level = 10 : i32, message = "bmd,bld->bml"}> : () -> ()
    %cst_26 = arith.constant dense<0.000000e+00> : vector<8x16x8xf32>
    %49 = tpu.matmul %33, %19, %cst_26 {dimension_numbers = #tpu.dot_dimension_numbers<[2], [2], [1], [1], [0, 0, 0, 1, 1, 1], [0], [0]>} : vector<8x16x32xbf16>, vector<8x8x32xbf16>, vector<8x16x8xf32> -> vector<8x16x8xf32>
    "tpu.trace_stop"() : () -> ()
    %cst_27 = arith.constant dense<0xFF800000> : vector<8x16xf32>
    %50 = vector.multi_reduction <maximumf>, %49, %cst_27 [2] : vector<8x16x8xf32> to vector<8x16xf32>
    %51 = vector.shape_cast %50 : vector<8x16xf32> to vector<8x16x1xf32>
    %52 = vector.broadcast %51 : vector<8x16x1xf32> to vector<8x16x8xf32>
    %53 = arith.subf %49, %52 : vector<8x16x8xf32>
    %54 = math.exp %53 : vector<8x16x8xf32>
    %cst_28 = arith.constant dense<0.000000e+00> : vector<8x16xf32>
    %55 = vector.multi_reduction <add>, %54, %cst_28 [2] : vector<8x16x8xf32> to vector<8x16xf32>
    %56 = vector.shape_cast %55 : vector<8x16xf32> to vector<8x16x1xf32>
    %57 = tpu.reciprocal %56 {approx = true} : vector<8x16x1xf32> -> vector<8x16x1xf32>
    %58 = vector.broadcast %57 : vector<8x16x1xf32> to vector<8x16x8xf32>
    %59 = arith.mulf %54, %58 : vector<8x16x8xf32>
    %60 = arith.truncf %59 : vector<8x16x8xf32> to vector<8x16x8xbf16>
    "tpu.trace_start"() <{level = 10 : i32, message = "bml,ble->bme"}> : () -> ()
    %cst_29 = arith.constant dense<0.000000e+00> : vector<8x16x32xf32>
    %61 = tpu.matmul %60, %0, %cst_29 {dimension_numbers = #tpu.dot_dimension_numbers<[2], [1], [1], [2], [0, 0, 0, 1, 1, 2], [0], [0]>} : vector<8x16x8xbf16>, vector<8x8x32xbf16>, vector<8x16x32xf32> -> vector<8x16x32xf32>
    "tpu.trace_stop"() : () -> ()
    %62 = vector.shape_cast %61 : vector<8x16x32xf32> to vector<8x512xf32>
    %c0_30 = arith.constant 0 : index
    %c0_31 = arith.constant 0 : index
    %63 = vector.load %arg8[%c0_30, %c0_31] : memref<8x512xf32, #tpu.memory_space<vmem>>, vector<8x512xf32>
    tpu.vector_store %arg8[%c0_30, %c0_31], %62 {strides = array<i32>} : memref<8x512xf32, #tpu.memory_space<vmem>>, vector<8x512xf32>,
    return
  }
  func.func @transform_0(%arg0: i32) -> (i32, i32, i32) {
    %c0_i32 = arith.constant 0 : i32
    %c0_i32_0 = arith.constant 0 : i32
    %c0_i32_1 = arith.constant 0 : i32
    return %arg0, %c0_i32, %c0_i32_0 : i32, i32, i32
  }
  func.func @transform_1(%arg0: i32) -> (i32, i32, i32) {
    %c0_i32 = arith.constant 0 : i32
    %c0_i32_0 = arith.constant 0 : i32
    %c0_i32_1 = arith.constant 0 : i32
    return %arg0, %c0_i32, %c0_i32_0 : i32, i32, i32
  }
  func.func @transform_2(%arg0: i32) -> (i32, i32) {
    %c0_i32 = arith.constant 0 : i32
    %c0_i32_0 = arith.constant 0 : i32
    %c0_i32_1 = arith.constant 0 : i32
    return %c0_i32, %c0_i32_0 : i32, i32
  }
  func.func @transform_3(%arg0: i32) -> (i32, i32) {
    %c0_i32 = arith.constant 0 : i32
    %c0_i32_0 = arith.constant 0 : i32
    %c0_i32_1 = arith.constant 0 : i32
    return %c0_i32, %c0_i32_0 : i32, i32
  }
  func.func @transform_4(%arg0: i32) -> (i32, i32) {
    %c0_i32 = arith.constant 0 : i32
    %c0_i32_0 = arith.constant 0 : i32
    %c0_i32_1 = arith.constant 0 : i32
    return %c0_i32, %c0_i32_0 : i32, i32
  }
  func.func @transform_5(%arg0: i32) -> (i32, i32) {
    %c0_i32 = arith.constant 0 : i32
    %c0_i32_0 = arith.constant 0 : i32
    %c0_i32_1 = arith.constant 0 : i32
    return %c0_i32, %c0_i32_0 : i32, i32
  }
  func.func @transform_6(%arg0: i32) -> (i32, i32) {
    %c0_i32 = arith.constant 0 : i32
    %c0_i32_0 = arith.constant 0 : i32
    return %arg0, %c0_i32 : i32, i32
  }
  func.func @transform_7(%arg0: i32) -> (i32, i32) {
    %c0_i32 = arith.constant 0 : i32
    %c0_i32_0 = arith.constant 0 : i32
    return %arg0, %c0_i32 : i32, i32
  }
}

</mosaic_0001>

<bundles_post_ra>
// kernel: tpu_custom_call.1
= control target key start
LH: loop header
LB: loop body
LE: loop exit
PB: predicated region body
PF: predicated region fallthrough
CT: control target
= control target key end

     0   :  { %s5598_s0 = inlined_call_operand.hbm [shape: bf16[16,8,32], index: 0, kind: input, shape index: {}]   ;;  %s5599_s1 = inlined_call_operand.hbm [shape: bf16[16,16,32], index: 1, kind: input, shape index: {}]   ;;  %s5600_s2 = inlined_call_operand.hbm [shape: bf16[32,32], index: 2, kind: input, shape index: {}]   ;;  %s5601_s3 = inlined_call_operand.hbm [shape: f32[1,32], index: 3, kind: input, shape index: {}]   ;;  %s5602_s4 = inlined_call_operand.hbm [shape: bf16[32,32], index: 4, kind: input, shape index: {}]   ;;  %s5603_s5 = inlined_call_operand.hbm [shape: f32[1,32], index: 5, kind: input, shape index: {}]   ;;  %s5604_s6 = inlined_call_operand.hbm [shape: f32[16,256], index: 6, kind: output, shape index: {0}]   ;;  %s5605_s7 = inlined_call_operand.hbm [shape: f32[16,512], index: 7, kind: output, shape index: {1}]  }
   0x1   :  { %5614 = sst [smem:[#allocation24_spill]] %s5598_s0 }
   0x2   :  { %5615 = sst [smem:[#allocation25_spill]] %s5600_s2 }
   0x3   :  { %5616 = sst [smem:[#allocation26_spill]] %s5601_s3 }
   0x4   :  { %5617 = sst [smem:[#allocation27_spill]] %s5602_s4 }
   0x5   :  { %13 = vsyncpa [#allocation3], 0 }
   0x6   :  { %15 = vsyncpa [#allocation3 + $0x1], 0 }
   0x7   :  { %16 = vsyncpa [#allocation6], 0 }
   0x8   :  { %18 = vsyncpa [#allocation6 + $0x1], 0 }
   0x9   :  { %19 = vsyncpa [#allocation9], 0 }
   0xa   :  { %20 = vsyncpa [#allocation12], 0 }
   0xb   :  { %21 = vsyncpa [#allocation4], 0 }
   0xc   :  { %23 = vsyncpa [#allocation4 + $0x1], 0 }
   0xd   :  { %24 = vsyncpa [#allocation15], 0 }
   0xe   :  { %26 = vsyncpa [#allocation15 + $0x1], 0  ;;  %s4484_s24 = smov 0   ;;  %s4486_s25 = smov 0  }
   0xf   :  { %s4488_s26 = smov 0   ;;  %s4490_s27 = smov 0  }
  0x10 LB: > { %s4505_s28 = sadd.s32 4294967295, %s4425_s27   ;;  %s3435_s29 = sadd.s32 4294967294, %s4425_s27   ;;  %s4425_s27 = sphi %s4490_s27, %s5648_s27   ;;  %s4421_s26 = sphi %s4488_s26, %s5647_s26   ;;  %s4417_s25 = sphi %s4486_s25, %s5646_s25   ;;  %s4413_s24 = sphi %s4484_s24, %s5645_s24  }
  0x11   : > { %p52_p0 = scmp.ne.s32.totalorder %s4417_s25, %s4413_s24  ;;  %p5606_p1 = scmp.eq.s32.totalorder %s4505_s28, 0 }
  0x12   : > { %p192_p3 = scmp.eq.s32.totalorder %s3435_s29, 1  ;;  %p3436_p5 = scmp.ge.s32.totalorder %s4425_s27, 1 }
  0x13   : > { %p4514_p4 = por %p5606_p1, %p52_p0  ;;  %p225_p7 = scmp.lt.s32.totalorder %s4425_s27, 3 }
  0x14   : > { %p4519_p6 = por %p192_p3, %p52_p0  ;;  %s4427_s10 = smov [#allocation7]  }
  0x15   : > { %s5618_s30 = scalar_select %p4514_p4, 1, 0 }
  0x16   : > { %s5619_s8 = scalar_select %p4519_p6, 1, 0 }
  0x17   : > { %p4524_p8 = pnand %p3436_p5, %p225_p7  ;;  %s237_s11 = sshll.u32 %s4427_s10, 4  ;;  %s4528_s11 = int_to_ptr.vmem [resolvable:$true] %s237_s11 }
  0x18   : > { %5620 = sst [smem:[#allocation23_spill]] %s5619_s8  ;;  %s4428_s13 = smov [#allocation8]  }
  0x19   : > { %s5621_s9 = scalar_select %p4524_p8, 1, 0 }
  0x1a   : > { %p3937_p9 = pneg %p4524_p8  ;;  %s251_s14 = sshll.u32 %s4428_s13, 4  ;;  %s4539_s14 = int_to_ptr.vmem [resolvable:$true] %s251_s14 }
  0x1b   : > { %s4429_s15 = smov [#allocation10]   ;;  %s5623_s2 = sld [smem:[#allocation25_spill]] }
  0x1c   : > { %p4535_p11 = pnand %p3937_p9, %p5606_p1  ;;  %s4541_s16 = sshll.u32 %s4429_s15, 4  ;;  %s262_s16 = int_to_ptr.vmem [resolvable:$true] %s4541_s16 }
  0x1e   : > { %p4551_p13 = pneg %p4535_p11 }
  0x21   : > { %s4139_s19 = scalar_lea.hbm %s5623_s2, 256 }
  0x22   : > { %p4140_p12 = scmp.ne.s32.totalorder %s5623_s2, %s4139_s19  ;;  %p4146_p5 = scmp.lt.u32.totalorder %s4139_s19, %s5623_s2 }
  0x24   : > { %p4142_p0 = pnand %p4551_p13, %p4140_p12 }
  0x26   : > { %p4143_p3 = pneg %p4142_p0 }
  0x28   : > { %p4148_p7 = pnand %p4146_p5, %p4143_p3 }
  0x2a   : > { %4151 = shalt.err (!%p4148_p7)
}
  0x2b   : > { %s4152_s10 = scalar_lea.vmem %s4528_s11, 256  ;;  %p4160_p2 = scmp.lt.s32.totalorder %s4528_s11, %s4528_s11 }
  0x2c   : > { %p4153_p9 = scmp.ne.s32.totalorder %s4528_s11, %s4152_s10  ;;  %p4161_p6 = scmp.lt.s32.totalorder %s4152_s10, %s4152_s10 }
  0x2e   : > { %p4155_p10 = pnand %p4153_p9, %p4551_p13  ;;  %p4162_p12 = por %p4161_p6, %p4160_p2 }
  0x30   : > { %p4156_p1 = pneg %p4155_p10 }
  0x32   : > { %p4163_p0 = pnand %p4162_p12, %p4156_p1 }
  0x34   : > { %4166 = shalt.err (!%p4163_p0)
}
  0x35   : > { %s5610_s13 = smov 64   ;;  %s5612_s15 = smov 4  }
  0x36   : > { %3940 = dma.hbm_to_vmem [thread:$0]  (!%p4535_p11), %s5623_s2, 256, %s4528_s11, [#allocation6], %s5610_s13, %s5610_s13, %s5612_s15  }
  0x37   : > { %s5625_s3 = sld [smem:[#allocation26_spill]] }
  0x3d   : > { %s4167_s21 = scalar_lea.hbm %s5625_s3, 16 }
  0x3e   : > { %p4168_p1 = scmp.ne.s32.totalorder %s5625_s3, %s4167_s21  ;;  %p4174_p10 = scmp.lt.u32.totalorder %s4167_s21, %s5625_s3 }
  0x40   : > { %p4170_p2 = pnand %p4168_p1, %p4551_p13 }
  0x42   : > { %p4171_p6 = pneg %p4170_p2 }
  0x44   : > { %p4176_p3 = pnand %p4174_p10, %p4171_p6 }
  0x46   : > { %4179 = shalt.err (!%p4176_p3)
}
  0x47   : > { %s4180_s11 = scalar_lea.vmem %s4539_s14, 16  ;;  %s4187_s17 = scalar_lea.vmem %s4539_s14, 32 }
  0x48   : > { %p4181_p5 = scmp.ne.s32.totalorder %s4539_s14, %s4180_s11  ;;  %p4188_p12 = scmp.lt.s32.totalorder %s4539_s14, %s4539_s14 }
  0x49   : > { %p4189_p0 = scmp.lt.s32.totalorder %s4187_s17, %s4180_s11 }
  0x4a   : > { %p4183_p7 = pnand %p4181_p5, %p4551_p13 }
  0x4b   : > { %p4190_p1 = por %p4189_p0, %p4188_p12 }
  0x4c   : > { %p4184_p9 = pneg %p4183_p7 }
  0x4e   : > { %p4191_p2 = pnand %p4190_p1, %p4184_p9 }
  0x50   : > { %4194 = shalt.err (!%p4191_p2)
}
  0x51   : > { %3943 = dma.hbm_to_vmem [thread:$0]  (!%p4535_p11), %s5625_s3, 16, %s4539_s14, [#allocation9]  }
  0x52   : > { %s5626_s4 = sld [smem:[#allocation27_spill]] }
  0x58   : > { %s4195_s21 = scalar_lea.hbm %s5626_s4, 256 }
  0x59   : > { %p4196_p6 = scmp.ne.s32.totalorder %s5626_s4, %s4195_s21  ;;  %p4202_p5 = scmp.lt.u32.totalorder %s4195_s21, %s5626_s4 }
  0x5b   : > { %p4198_p10 = pnand %p4196_p6, %p4551_p13 }
  0x5d   : > { %p4199_p3 = pneg %p4198_p10 }
  0x5f   : > { %p4204_p7 = pnand %p4202_p5, %p4199_p3 }
  0x61   : > { %4207 = shalt.err (!%p4204_p7)
}
  0x62   : > { %s4208_s17 = scalar_lea.vmem %s262_s16, 256  ;;  %p4216_p1 = scmp.lt.s32.totalorder %s262_s16, %s262_s16 }
  0x63   : > { %p4209_p9 = scmp.ne.s32.totalorder %s262_s16, %s4208_s17  ;;  %p4217_p2 = scmp.lt.s32.totalorder %s4208_s17, %s4208_s17 }
  0x65   : > { %p4211_p12 = pnand %p4209_p9, %p4551_p13  ;;  %p4218_p4 = por %p4217_p2, %p4216_p1 }
  0x67   : > { %p4212_p0 = pneg %p4211_p12 }
  0x69   : > { %p4219_p8 = pnand %p4218_p4, %p4212_p0 }
  0x6b   : > { %4222 = shalt.err (!%p4219_p8)
}
  0x6c   : > { %3946 = dma.hbm_to_vmem [thread:$0]  (!%p4535_p11), %s5626_s4, 256, %s262_s16, [#allocation9], %s5610_s13, %s5610_s13, %s5612_s15  }
  0x6d   : > { %s4432_s18 = smov [#allocation11]   ;;  %s4223_s23 = scalar_lea.hbm %s5603_s5, 16 }
  0x6e   : > { %s275_s19 = sshll.u32 %s4432_s18, 4  ;;  %p4224_p4 = scmp.ne.s32.totalorder %s5603_s5, %s4223_s23  ;;  %s276_s19 = int_to_ptr.vmem [resolvable:$true] %s275_s19 }
  0x6f   : > { %p4230_p10 = scmp.lt.u32.totalorder %s4223_s23, %s5603_s5 }
  0x70   : > { %p4226_p8 = pnand %p4224_p4, %p4551_p13 }
  0x72   : > { %p4227_p6 = pneg %p4226_p8 }
  0x74   : > { %p4232_p3 = pnand %p4230_p10, %p4227_p6 }
  0x76   : > { %4235 = shalt.err (!%p4232_p3)
}
  0x77   : > { %s4236_s16 = scalar_lea.vmem %s276_s19, 16  ;;  %s4243_s14 = scalar_lea.vmem %s276_s19, 32 }
  0x78   : > { %p4237_p5 = scmp.ne.s32.totalorder %s276_s19, %s4236_s16  ;;  %p4244_p12 = scmp.lt.s32.totalorder %s276_s19, %s276_s19 }
  0x79   : > { %p4245_p0 = scmp.lt.s32.totalorder %s4243_s14, %s4236_s16 }
  0x7a   : > { %p4239_p7 = pnand %p4237_p5, %p4551_p13 }
  0x7b   : > { %p4246_p1 = por %p4245_p0, %p4244_p12 }
  0x7c   : > { %p4240_p9 = pneg %p4239_p7 }
  0x7e   : > { %p4247_p2 = pnand %p4246_p1, %p4240_p9 }
  0x80   : > { %4250 = shalt.err (!%p4247_p2)
}
  0x81   : > { %3949 = dma.hbm_to_vmem [thread:$0]  (!%p4535_p11), %s5603_s5, 16, %s276_s19, [#allocation12]  }
  0x82   : > { %s4640_s22 = sadd.s32 1, %s4425_s27   ;;  %s39_s20 = sadd.s32 1, %s4421_s26 }
  0x83   : > { %s36_s12 = ssub.s32 %s4425_s27, %s4640_s22  ;;  %p46_p13 = scmp.ne.s32.totalorder %s4421_s26, %s4417_s25 }
  0x84   : > { %p37_p4 = scmp.eq.s32.totalorder %s36_s12, 0  ;;  %p47_p8 = scmp.eq.s32.totalorder %s4425_s27, 0 }
  0x85   : > { %p5627_p6 = scmp.eq.s32.totalorder %s4505_s28, 1  ;;  %p3968_p3 = scmp.lt.s32.totalorder %s4425_s27, 2 }
  0x86   : > { %s4656_s23 = scalar_select %p37_p4, %s4421_s26, %s39_s20  }
  0x87   : > { %p4650_p10 = por %p5627_p6, %p46_p13  ;;  %p48_p5 = por %p47_p8, %p46_p13 }
  0x88   : > { %s4659_s29 = sand.u32 1, %s4421_s26   ;;  %s3548_s10 = sshll.u32 %s4425_s27, 9 }
  0x89   : > { %s3442_s19 = sshll.u32 %s4659_s29, 5  ;;  %s5629_s0 = sld [smem:[#allocation24_spill]] }
  0x8a   : > { %s290_s14 = scalar_lea.vmem [#allocation2], %s3442_s19  ;;  %p4670_p11 = pnand %p3968_p3, %p48_p5 }
  0x8b   : > { %s297_s8 = sshll.u32 %s290_s14, 4  ;;  %s3445_s12 = sshll.u32 %s4659_s29, 6  ;;  %s4668_s8 = int_to_ptr.vmem [resolvable:$true] %s297_s8 }
  0x8c   : > { %s287_s13 = scalar_lea.sflag [#allocation3], %s4659_s29  ;;  %p4253_p9 = pneg %p4670_p11 }
  0x8f   : > { %s4666_s16 = scalar_lea.hbm %s5629_s0, %s3548_s10  ;;  %s4256_s17 = scalar_lea.hbm %s5629_s0, 1024 }
  0x90   : > { %s4251_s11 = scalar_lea.hbm %s4666_s16, 512  ;;  %p4257_p1 = scmp.lt.u32.totalorder %s4666_s16, %s5629_s0 }
  0x91   : > { %p4252_p7 = scmp.ne.s32.totalorder %s4666_s16, %s4251_s11  ;;  %p4258_p2 = scmp.lt.u32.totalorder %s4256_s17, %s4251_s11 }
  0x92   : > { %p4260_p4 = scmp.lt.u32.totalorder %s4251_s11, %s4666_s16 }
  0x93   : > { %p4254_p12 = pnand %p4253_p9, %p4252_p7  ;;  %p4259_p13 = por %p4258_p2, %p4257_p1 }
  0x95   : > { %p4255_p0 = pneg %p4254_p12  ;;  %p4261_p8 = por %p4260_p4, %p4259_p13 }
  0x97   : > { %p4262_p6 = pnand %p4261_p8, %p4255_p0 }
  0x99   : > { %4265 = shalt.err (!%p4262_p6)
}
  0x9a   : > { %s4266_s20 = scalar_lea.vmem %s4668_s8, 512  ;;  %s4433_s19 = smov [#allocation2]  }
  0x9b   : > { %p4267_p3 = scmp.ne.s32.totalorder %s4668_s8, %s4266_s20  ;;  %s4271_s10 = sshll.u32 %s4433_s19, 4  ;;  %s4272_s10 = int_to_ptr.vmem [resolvable:$false] %s4271_s10 }
  0x9c   : > { %s4273_s15 = scalar_lea.vmem %s4272_s10, 1024  ;;  %p4274_p12 = scmp.lt.s32.totalorder %s4668_s8, %s4272_s10 }
  0x9d   : > { %p4269_p5 = pnand %p4267_p3, %p4253_p9  ;;  %p4275_p1 = scmp.lt.s32.totalorder %s4273_s15, %s4266_s20 }
  0x9f   : > { %p4270_p7 = pneg %p4269_p5  ;;  %p4276_p2 = por %p4275_p1, %p4274_p12 }
  0xa1   : > { %p4277_p13 = pnand %p4276_p2, %p4270_p7 }
  0xa3   : > { %4280 = shalt.err (!%p4277_p13)
}
  0xa4   : > { %s5631_s11 = smov 4   ;;  %s5632_s17 = smov 64  }
  0xa5   : > { %3953 = dma.hbm_to_vmem [thread:$0]  (!%p4670_p11), %s4666_s16, 512, %s4668_s8, %s287_s13, %s5632_s17, %s5632_s17, %s5631_s11  }
  0xa6   : > { %s3550_s14 = sshll.u32 %s4425_s27, 10  ;;  %s311_s15 = scalar_lea.vmem [#allocation5], %s3445_s12 }
  0xa7   : > { %s4711_s10 = scalar_lea.hbm %s5599_s1, %s3550_s14  ;;  %s319_s0 = sshll.u32 %s311_s15, 4  ;;  %s4715_s0 = int_to_ptr.vmem [resolvable:$true] %s319_s0 }
  0xa8   : > { %s5633_s2 = sand.u32 1, %s4425_s27   ;;  %s4281_s4 = scalar_lea.hbm %s4711_s10, 1024 }
  0xa9   : > { %s4719_s3 = scalar_lea.sflag [#allocation6], %s5633_s2  ;;  %p4282_p0 = scmp.ne.s32.totalorder %s4711_s10, %s4281_s4 }
  0xaa   : > { %s4286_s29 = scalar_lea.hbm %s5599_s1, 2048  ;;  %p4287_p6 = scmp.lt.u32.totalorder %s4711_s10, %s5599_s1 }
  0xab   : > { %p4284_p4 = pnand %p4282_p0, %p4253_p9  ;;  %p4288_p3 = scmp.lt.u32.totalorder %s4286_s29, %s4281_s4 }
  0xac   : > { %p4290_p7 = scmp.lt.u32.totalorder %s4281_s4, %s4711_s10 }
  0xad   : > { %p4285_p8 = pneg %p4284_p4  ;;  %p4289_p5 = por %p4288_p3, %p4287_p6 }
  0xaf   : > { %p4291_p12 = por %p4290_p7, %p4289_p5 }
  0xb1   : > { %p4292_p1 = pnand %p4291_p12, %p4285_p8 }
  0xb3   : > { %4295 = shalt.err (!%p4292_p1)
}
  0xb4   : > { %s4296_s2 = scalar_lea.vmem %s4715_s0, 1024  ;;  %s4434_s12 = smov [#allocation5]  }
  0xb5   : > { %p4297_p2 = scmp.ne.s32.totalorder %s4715_s0, %s4296_s2  ;;  %s4301_s19 = sshll.u32 %s4434_s12, 4  ;;  %s4302_s19 = int_to_ptr.vmem [resolvable:$false] %s4301_s19 }
  0xb6   : > { %s4303_s20 = scalar_lea.vmem %s4302_s19, 2048  ;;  %p4304_p4 = scmp.lt.s32.totalorder %s4715_s0, %s4302_s19 }
  0xb7   : > { %p4299_p13 = pnand %p4297_p2, %p4253_p9  ;;  %p4305_p6 = scmp.lt.s32.totalorder %s4303_s20, %s4296_s2 }
  0xb9   : > { %p4300_p0 = pneg %p4299_p13  ;;  %p4306_p3 = por %p4305_p6, %p4304_p4 }
  0xbb   : > { %p4307_p5 = pnand %p4306_p3, %p4300_p0 }
  0xbd   : > { %4310 = shalt.err (!%p4307_p5)
}
  0xbe   : > { %3956 = dma.hbm_to_vmem [thread:$0]  (!%p4670_p11), %s4711_s10, 1024, %s4715_s0, %s4719_s3, %s5632_s17, %s5632_s17, %s5631_s11  }
  0xbf   : > { %p5634_p9 = scmp.ne.s32.totalorder %s5621_s9, 0 }
  0xc0   : > { %s4751_s4 = sand.u32 (!%p5634_p9), 1, %s4417_s25   ;;  %p5635_p8 = scmp.ne.s32.totalorder (!%p5634_p9), %s5618_s30, 0 }
  0xc1   : > { %331 = sbr.rel (%p5634_p9) target bundleno = 2198 (0x896), region = 44  ;;  %s3450_s15 = sshll.u32 (!%p5634_p9), %s4751_s4, 5 }
  0xc2   : > { %s334_s13 = scalar_lea.sflag (!%p5634_p9), [#allocation3], %s4751_s4  ;;  %s4757_s18 = scalar_lea.vmem (!%p5634_p9), [#allocation2], %s3450_s15 }
  0xc8   : > { %4384 = dma.done.wait (%p5635_p8), %s334_s13, 512  }
  0xc9   : > { %4386 = vsyncadd (%p5635_p8), %s334_s13, 4294966784  ;;  %s342_s0 = sand.u32 1, %s4505_s28   ;;  %s3451_s3 = sshll.u32 %s4751_s4, 6 }
  0xca   : > { %s343_s9 = scalar_lea.sflag [#allocation6], %s342_s0  ;;  %s4765_s11 = scalar_lea.vmem [#allocation5], %s3451_s3 }
  0xcb   : > { %4388 = dma.done.wait (%p5635_p8), %s343_s9, 1024  }
  0xcc   : > { %4390 = vsyncadd (%p5635_p8), %s343_s9, 4294966272  ;;  %p5636_p11 = scmp.eq.s32.totalorder %s4505_s28, 0 }
  0xce   : > { %4392 = dma.done.wait (%p5636_p11), [#allocation6], 256   ;;  %p5637_p7 = pmov %p5636_p11 }
  0xd0   : > { %4394 = vsyncadd (%p5637_p7), [#allocation6], 4294967040  ;;  %p5638_p12 = pmov %p5637_p7 }
  0xd1   : > { %p5639_p1 = pmov %p5637_p7 }
  0xd2   : > { %4396 = dma.done.wait (%p5638_p12), [#allocation9], 272  }
  0xd3   : > { %4398 = vsyncadd (%p5639_p1), [#allocation9], 4294967024  ;;  %p5640_p2 = pmov %p5639_p1 }
  0xd4   : > { %p5641_p13 = pmov %p5639_p1 }
  0xd5   : > { %4400 = dma.done.wait (%p5640_p2), [#allocation12], 16  }
  0xd6   : > { %4402 = vsyncadd (%p5641_p13), [#allocation12], 4294967280  ;;  %v4019_v0 = vld [vmem:[#allocation7] sm:$0xff]   ;;  %v4020_v1 = vld [vmem:[#allocation7 + $0x8] sm:$0xff]   ;;  %vm478_vm0 = vcmask 261120   ;;  %vm4436_vm1 = vmmov 0  }
  0xd7   : > { %3657 = vmatprep.subr.bf16.mxu0 %v4019_v0  ;;  %v406_v2 = vld [vmem:[%s4757_s18] sm:$0xf]  ;;  %v407_v3 = vld [vmem:[%s4757_s18 + $0x4] sm:$0xf]  ;;  %v408_v5 = vld [vmem:[%s4757_s18 + $0x8] sm:$0xf] }
  0xd8   : > { %3658 = vmatpush3.bf16.msra.mxu0 %v4019_v0  ;;  %v3459_v4 = vcombine.low %v406_v2, %v407_v3  ;;  %v409_v6 = vld [vmem:[%s4757_s18 + $0xc] sm:$0xf]  ;;  %v410_v7 = vld [vmem:[%s4757_s18 + $0x10] sm:$0xf]  ;;  %v411_v8 = vld [vmem:[%s4757_s18 + $0x14] sm:$0xf] }
  0xd9   : > { %3659 = vmatprep.subr.bf16.mxu0 %v4020_v1  ;;  %v3460_v9 = vcombine.low %v408_v5, %v409_v6  ;;  %v3461_v10 = vcombine.low %v410_v7, %v411_v8  ;;  %v412_v11 = vld [vmem:[%s4757_s18 + $0x18] sm:$0xf]  ;;  %v413_v12 = vld [vmem:[%s4757_s18 + $0x1c] sm:$0xf]  ;;  %v4795_v14 = vld [vmem:[%s4765_s11] sm:$0xff]   ;;  %vm1393_vm2 = vcmask 130048  }
  0xda   : > { %3661 = vmatprep.mubr.msk.bf16.mxu0 %vm478_vm0, %v3459_v4  ;;  %v3462_v13 = vcombine.low %v412_v11, %v413_v12  ;;  %v4801_v15 = vld [vmem:[%s4765_s11 + $0x8] sm:$0xff]   ;;  %v4804_v16 = vld [vmem:[%s4765_s11 + $0x10] sm:$0xff]   ;;  %v4811_v17 = vld [vmem:[%s4765_s11 + $0x18] sm:$0xff]   ;;  %vm2340_vm3 = vcmask 64512   ;;  %vm2528_vm4 = vcmask 1043456   ;;  %s4439_s30 = smov 32  }
  0xdb   : > { %v4814_v18 = vld [vmem:[%s4765_s11 + $0x20] sm:$0xff]   ;;  %v4821_v19 = vld [vmem:[%s4765_s11 + $0x28] sm:$0xff]   ;;  %v4824_v20 = vld [vmem:[%s4765_s11 + $0x30] sm:$0xff]   ;;  %s4440_s17 = smov 64   ;;  %s4441_s10 = smov 96   ;;  %vm2003_vm5 = vcmask 523264  }
  0xdc   : > { %3660 = vmatpush3.bf16.msra.mxu0 %v4020_v1  ;;  %v4831_v21 = vld [vmem:[%s4765_s11 + $0x38] sm:$0xff]   ;;  %v4835_v24 = vld [vmem:[#allocation8] ss:$0 sm:$0xff]  ;;  %s3456_s16 = sshll.u32 %s4751_s4, 4  ;;  %vm2005_vm6 = vcmask 785408   ;;  %s3559_s14 = sshll.u32 %s4505_s28, 8 }
  0xdd   : > { %3681 = vmatprep.subr.bf16.mxu0 %v4019_v0  ;;  %v4033_v22 = vld [vmem:[#allocation10] sm:$0xff]   ;;  %v4034_v23 = vld [vmem:[#allocation10 + $0x8] sm:$0xff]   ;;  %s5409_s29 = scalar_lea.vmem [#allocation13], %s3456_s16  ;;  %s5509_s19 = scalar_lea.hbm %s5604_s6, %s3559_s14 }
  0xde   : > { %3669 = vmatprep.subr.bf16.mxu1 %v4033_v22  ;;  %s3258_s8 = sshll.u32 %s5409_s29, 4  ;;  %s3239_s20 = scalar_lea.sflag [#allocation4], %s4751_s4  ;;  %s3259_s8 = int_to_ptr.vmem [resolvable:$true] %s3258_s8 }
  0xdf   : > { %3662 = vmatmul.mubr.msk.bf16.vlgmr.msra.gmra.mrb[0].mxu0 %vm478_vm0, %v3460_v9  ;;  %3670 = vmatpush3.bf16.msra.mxu1 %v4033_v22  ;;  %s4311_s13 = scalar_lea.vmem %s3259_s8, 256 }
  0xe0   : > { %3665 = vmatprep.mubr.msk.bf16.mxu0 %vm478_vm0, %v3461_v10  ;;  %3682 = vmatpush3.bf16.msra.mxu0 %v4019_v0  ;;  %p4312_p0 = scmp.ne.s32.totalorder %s3259_s8, %s4311_s13 }
  0xe1   : > { %3683 = vmatprep.subr.bf16.mxu0 %v4020_v1  ;;  %3671 = vmatprep.subr.bf16.mxu1 %v4034_v23 }
  0xe2   : > { %p4313_p4 = pnand %p4312_p0, %p4650_p10 }
  0xe3   : > { %3672 = vmatpush3.bf16.msra.mxu1 %v4034_v23 }
  0xe4   : > { %3684 = vmatpush3.bf16.msra.mxu0 %v4020_v1  ;;  %3701 = vmatprep.subr.bf16.mxu1 %v4033_v22  ;;  %p4314_p6 = pneg %p4313_p4 }
  0xe7   : > { %3666 = vmatmul.mubr.msk.bf16.gmra.mrb[4].mxu0 %vm478_vm0, %v3462_v13 }
  0xe8   : > { %3685 = vmatprep.mubr.msk.bf16.mxu0 %vm478_vm0, %v4795_v14 }
  0xef   : > { %3686 = vmatmul.mubr.msk.bf16.vlgmr.msra.gmra.mrb[8].mxu0 %vm478_vm0, %v4801_v15 }
  0xf0   : > { %3689 = vmatprep.mubr.msk.bf16.mxu0 %vm478_vm0, %v4804_v16 }
  0xf7   : > { %3690 = vmatmul.mubr.msk.bf16.gmra.mrb[12].mxu0 %vm478_vm0, %v4811_v17 }
  0xf8   : > { %3693 = vmatprep.mubr.msk.bf16.mxu0 %vm478_vm0, %v4814_v18 }
  0xff   : > { %3694 = vmatmul.mubr.msk.bf16.gmra.mrb[16].mxu0 %vm478_vm0, %v4821_v19 }
 0x100   : > { %3697 = vmatprep.mubr.msk.bf16.mxu0 %vm478_vm0, %v4824_v20 }
 0x107   : > { %3698 = vmatmul.mubr.msk.bf16.gmra.mrb[20].mxu0 %vm478_vm0, %v4831_v21 }
 0x1b2   : > { %v3663_v25 = vpop.f32.mrb[0].mxu0 }
 0x1b3   : > { %v534_v26 = vadd.f32 %v3663_v25, %v4835_v24  ;;  %v525_v27 = vpop.f32.mrb[1].mxu0 }
 0x1b4   : > { %v526_v28 = vadd.f32 %v4835_v24, %v525_v27  ;;  %v3664_v29 = vpop.f32.mrb[2].mxu0 }
 0x1b5   : > { %v537_v30 = vadd.f32 %v3664_v29, %v4835_v24  ;;  %v528_v31 = vpop.f32.mrb[3].mxu0  ;;  %v558_v33 = vmax.f32 %v534_v26, 0.0 }
 0x1b6   : > { %v529_v32 = vadd.f32 %v4835_v24, %v528_v31  ;;  %v556_v35 = vmax.f32 %v526_v28, 0.0 }
 0x1b7   : > { %v559_v34 = vmax.f32 %v537_v30, 0.0 }
 0x1b8   : > { %v557_v36 = vmax.f32 %v529_v32, 0.0 }
 0x1b9   : > { %v565_v37 = vpack.c.bf16 %v559_v34, %v558_v33 }
 0x1ba   : > { %v3667_v38 = vpop.f32.mrb[4].mxu0  ;;  %v564_v39 = vpack.c.bf16 %v557_v36, %v556_v35 }
 0x1bb   : > { %v550_v40 = vadd.f32 %v3667_v38, %v4835_v24  ;;  %v541_v41 = vpop.f32.mrb[5].mxu0 }
 0x1bc   : > { %v542_v42 = vadd.f32 %v4835_v24, %v541_v41  ;;  %v3668_v43 = vpop.f32.mrb[6].mxu0  ;;  %3673 = vmatprep.mubr.msk.bf16.mxu1 %vm478_vm0, %v564_v39 }
 0x1bd   : > { %v553_v44 = vadd.f32 %v3668_v43, %v4835_v24  ;;  %v544_v45 = vpop.f32.mrb[7].mxu0  ;;  %3674 = vmatmul.mubr.msk.bf16.vlgmr.msra.gmra.mrb[0].mxu1 %vm478_vm0, %v565_v37  ;;  %v562_v47 = vmax.f32 %v550_v40, 0.0 }
 0x1be   : > { %v545_v46 = vadd.f32 %v4835_v24, %v544_v45  ;;  %3702 = vmatpush3.bf16.msra.mxu1 %v4033_v22  ;;  %v560_v49 = vmax.f32 %v542_v42, 0.0 }
 0x1bf   : > { %v563_v48 = vmax.f32 %v553_v44, 0.0  ;;  %3703 = vmatprep.subr.bf16.mxu1 %v4034_v23 }
 0x1c0   : > { %v561_v50 = vmax.f32 %v545_v46, 0.0 }
 0x1c1   : > { %v567_v51 = vpack.c.bf16 %v563_v48, %v562_v47 }
 0x1c2   : > { %v566_v52 = vpack.c.bf16 %v561_v50, %v560_v49  ;;  %v3687_v53 = vpop.f32.mrb[8].mxu0  ;;  %3704 = vmatpush3.bf16.msra.mxu1 %v4034_v23 }
 0x1c3   : > { %v802_v54 = vadd.f32 %v3687_v53, %v4835_v24  ;;  %v793_v55 = vpop.f32.mrb[9].mxu0 }
 0x1c4   : > { %v794_v56 = vadd.f32 %v4835_v24, %v793_v55  ;;  %3677 = vmatprep.mubr.msk.bf16.mxu1 %vm478_vm0, %v566_v52  ;;  %v3688_v57 = vpop.f32.mrb[10].mxu0 }
 0x1c5   : > { %v805_v58 = vadd.f32 %v3688_v57, %v4835_v24  ;;  %3678 = vmatmul.mubr.msk.bf16.gmra.mrb[4].mxu1 %vm478_vm0, %v567_v51  ;;  %v796_v59 = vpop.f32.mrb[11].mxu0  ;;  %v858_v61 = vmax.f32 %v802_v54, 0.0  ;;  %v4435_v54 = vmov 0.0  }
 0x1c6   : > { %v797_v60 = vadd.f32 %v4835_v24, %v796_v59  ;;  %v856_v63 = vmax.f32 %v794_v56, 0.0  ;;  %3727 = vmatprep.subr.bf16.mxu1 %v4435_v54  ;;  %3721 = vmatprep.subr.bf16.mxu0 %v4435_v54 }
 0x1c7   : > { %v859_v62 = vmax.f32 %v805_v58, 0.0  ;;  %3723 = vmatprep.mubr.msk.bf16.mxu0 %vm4436_vm1, %v4435_v54 }
 0x1c8   : > { %v857_v0 = vmax.f32 %v797_v60, 0.0 }
 0x1c9   : > { %v873_v1 = vpack.c.bf16 %v859_v62, %v858_v61  ;;  %v4887_v62 = vld [vmem:[#allocation11] ss:$0 sm:$0xff] }
 0x1ca   : > { %v872_v2 = vpack.c.bf16 %v857_v0, %v856_v63  ;;  %v3691_v3 = vpop.f32.mrb[12].mxu0 }
 0x1cb   : > { %v818_v4 = vadd.f32 %v3691_v3, %v4835_v24  ;;  %v809_v5 = vpop.f32.mrb[13].mxu0 }
 0x1cc   : > { %v810_v6 = vadd.f32 %v4835_v24, %v809_v5  ;;  %v3692_v7 = vpop.f32.mrb[14].mxu0  ;;  %3705 = vmatprep.mubr.msk.bf16.mxu1 %vm478_vm0, %v872_v2 }
 0x1cd   : > { %v821_v8 = vadd.f32 %v3692_v7, %v4835_v24  ;;  %v812_v9 = vpop.f32.mrb[15].mxu0  ;;  %3706 = vmatmul.mubr.msk.bf16.vlgmr.msra.gmra.mrb[8].mxu1 %vm478_vm0, %v873_v1  ;;  %v862_v11 = vmax.f32 %v818_v4, 0.0 }
 0x1ce   : > { %v813_v10 = vadd.f32 %v4835_v24, %v812_v9  ;;  %v860_v13 = vmax.f32 %v810_v6, 0.0 }
 0x1cf   : > { %v863_v12 = vmax.f32 %v821_v8, 0.0 }
 0x1d0   : > { %v861_v22 = vmax.f32 %v813_v10, 0.0 }
 0x1d1   : > { %v875_v23 = vpack.c.bf16 %v863_v12, %v862_v11 }
 0x1d2   : > { %v874_v25 = vpack.c.bf16 %v861_v22, %v860_v13  ;;  %v3695_v26 = vpop.f32.mrb[16].mxu0 }
 0x1d3   : > { %v834_v27 = vadd.f32 %v3695_v26, %v4835_v24  ;;  %v825_v28 = vpop.f32.mrb[17].mxu0 }
 0x1d4   : > { %v826_v29 = vadd.f32 %v4835_v24, %v825_v28  ;;  %v3696_v30 = vpop.f32.mrb[18].mxu0  ;;  %3709 = vmatprep.mubr.msk.bf16.mxu1 %vm478_vm0, %v874_v25 }
 0x1d5   : > { %v866_v31 = vmax.f32 %v834_v27, 0.0  ;;  %v837_v32 = vadd.f32 %v3696_v30, %v4835_v24  ;;  %v828_v33 = vpop.f32.mrb[19].mxu0  ;;  %3710 = vmatmul.mubr.msk.bf16.gmra.mrb[12].mxu1 %vm478_vm0, %v875_v23 }
 0x1d6   : > { %v864_v34 = vmax.f32 %v826_v29, 0.0  ;;  %v829_v35 = vadd.f32 %v4835_v24, %v828_v33 }
 0x1d7   : > { %v867_v36 = vmax.f32 %v837_v32, 0.0 }
 0x1d8   : > { %v865_v37 = vmax.f32 %v829_v35, 0.0 }
 0x1d9   : > { %v877_v38 = vpack.c.bf16 %v867_v36, %v866_v31 }
 0x1da   : > { %v876_v39 = vpack.c.bf16 %v865_v37, %v864_v34  ;;  %v3699_v40 = vpop.f32.mrb[20].mxu0 }
 0x1db   : > { %v850_v41 = vadd.f32 %v3699_v40, %v4835_v24  ;;  %v841_v42 = vpop.f32.mrb[21].mxu0 }
 0x1dc   : > { %v842_v43 = vadd.f32 %v4835_v24, %v841_v42  ;;  %v3700_v44 = vpop.f32.mrb[22].mxu0  ;;  %3713 = vmatprep.mubr.msk.bf16.mxu1 %vm478_vm0, %v876_v39 }
 0x1dd   : > { %v870_v45 = vmax.f32 %v850_v41, 0.0  ;;  %v853_v46 = vadd.f32 %v3700_v44, %v4835_v24  ;;  %v844_v47 = vpop.f32.mrb[23].mxu0  ;;  %3714 = vmatmul.mubr.msk.bf16.gmra.mrb[16].mxu1 %vm478_vm0, %v877_v38 }
 0x1de   : > { %v868_v48 = vmax.f32 %v842_v43, 0.0  ;;  %v845_v49 = vadd.f32 %v4835_v24, %v844_v47 }
 0x1df   : > { %v871_v50 = vmax.f32 %v853_v46, 0.0 }
 0x1e0   : > { %v869_v51 = vmax.f32 %v845_v49, 0.0 }
 0x1e1   : > { %v879_v52 = vpack.c.bf16 %v871_v50, %v870_v45 }
 0x1e2   : > { %v878_v53 = vpack.c.bf16 %v869_v51, %v868_v48 }
 0x1e4   : > { %3717 = vmatprep.mubr.msk.bf16.mxu1 %vm478_vm0, %v878_v53 }
 0x1e5   : > { %3718 = vmatmul.mubr.msk.bf16.gmra.mrb[20].mxu1 %vm478_vm0, %v879_v52 }
 0x1e6   : > { %3729 = vmatprep.mubr.msk.bf16.mxu1 %vm4436_vm1, %v4435_v54 }
 0x290   : > { %v3675_v24 = vpop.f32.mrb[0].mxu1 }
 0x291   : > { %v632_v55 = vpop.f32.mrb[1].mxu1  ;;  %v641_v43 = vadd.f32 %v3675_v24, %v4887_v62 }
 0x292   : > { %v3676_v56 = vpop.f32.mrb[2].mxu1  ;;  %v633_v13 = vadd.f32 %v4887_v62, %v632_v55 }
 0x293   : > { %v635_v57 = vpop.f32.mrb[3].mxu1  ;;  %v644_v40 = vadd.f32 %v3676_v56, %v4887_v62  ;;  %v665_v56 = vmax.f32 %v641_v43, 0.0 }
 0x294   : > { %v636_v11 = vadd.f32 %v4887_v62, %v635_v57  ;;  %v663_v34 = vmax.f32 %v633_v13, 0.0 }
 0x295   : > { %v666_v53 = vmax.f32 %v644_v40, 0.0 }
 0x296   : > { %v664_v31 = vmax.f32 %v636_v11, 0.0  ;;  %v4915_v44 = vpack.c.bf16 %v663_v34, %v663_v34 }
 0x298   : > { %v4879_v58 = vpop.f32.mrb[4].mxu1  ;;  %v4910_v41 = vpack.c.bf16 %v664_v31, %v664_v31 }
 0x299   : > { %v4881_v59 = vpop.f32.mrb[5].mxu1 }
 0x29a   : > { %v4883_v60 = vpop.f32.mrb[6].mxu1 }
 0x29b   : > { %v4885_v61 = vpop.f32.mrb[7].mxu1  ;;  %v660_v34 = vadd.f32 %v4883_v60, %v4887_v62 }
 0x29d   : > { %v670_v43 = vmax.f32 %v660_v34, 0.0 }
 0x2a0   : > { %v3707_v63 = vpop.f32.mrb[8].mxu1 }
 0x2a1   : > { %v947_v0 = vadd.f32 %v3707_v63, %v4887_v62  ;;  %v938_v1 = vpop.f32.mrb[9].mxu1 }
 0x2a2   : > { %v939_v2 = vadd.f32 %v4887_v62, %v938_v1  ;;  %v3708_v3 = vpop.f32.mrb[10].mxu1 }
 0x2a3   : > { %v950_v4 = vadd.f32 %v3708_v3, %v4887_v62  ;;  %v941_v5 = vpop.f32.mrb[11].mxu1  ;;  %v1003_v7 = vmax.f32 %v947_v0, 0.0  ;;  %v4937_v3 = vpack.c.bf16 %v666_v53, %v666_v53 }
 0x2a4   : > { %v942_v6 = vadd.f32 %v4887_v62, %v941_v5  ;;  %v1001_v9 = vmax.f32 %v939_v2, 0.0 }
 0x2a5   : > { %v1004_v8 = vmax.f32 %v950_v4, 0.0  ;;  %v652_v4 = vadd.f32 %v4887_v62, %v4885_v61 }
 0x2a6   : > { %v1002_v10 = vmax.f32 %v942_v6, 0.0  ;;  %v4943_v6 = vpack.c.bf16 %v665_v56, %v665_v56 }
 0x2a7   : > { %v4894_v12 = vpack.c.bf16 %v1004_v8, %v1003_v7  ;;  %v649_v7 = vadd.f32 %v4887_v62, %v4881_v59 }
 0x2a8   : > { %v4897_v22 = vpack.c.bf16 %v1002_v10, %v1001_v9  ;;  %v3711_v23 = vpop.f32.mrb[12].mxu1 }
 0x2a9   : > { %v963_v25 = vadd.f32 %v3711_v23, %v4887_v62  ;;  %v954_v26 = vpop.f32.mrb[13].mxu1  ;;  %v1075_v27 = vsel %vm478_vm0, %v4894_v12, 0 }
 0x2aa   : > { %v955_v28 = vadd.f32 %v4887_v62, %v954_v26  ;;  %v3712_v29 = vpop.f32.mrb[14].mxu1  ;;  %3728 = vmatpush3.bf16.xpose.msra.mxu1 %v1075_v27  ;;  %v1029_v30 = vsel %vm478_vm0, %v4897_v22, 0 }
 0x2ab   : > { %v966_v32 = vadd.f32 %v3712_v29, %v4887_v62  ;;  %v957_v33 = vpop.f32.mrb[15].mxu1  ;;  %3722 = vmatpush3.bf16.xpose.msra.mxu0 %v1029_v30  ;;  %3739 = vmatprep.subr.bf16.mxu1 %v4435_v54  ;;  %v1007_v36 = vmax.f32 %v963_v25, 0.0  ;;  %v668_v25 = vmax.f32 %v652_v4, 0.0 }
 0x2ac   : > { %v958_v35 = vadd.f32 %v4887_v62, %v957_v33  ;;  %3733 = vmatprep.subr.bf16.mxu0 %v4435_v54  ;;  %v1005_v38 = vmax.f32 %v955_v28, 0.0  ;;  %v667_v28 = vmax.f32 %v649_v7, 0.0 }
 0x2ad   : > { %v1008_v37 = vmax.f32 %v966_v32, 0.0 }
 0x2ae   : > { %v1006_v39 = vmax.f32 %v958_v35, 0.0  ;;  %v4969_v35 = vpack.c.bf16 %v668_v25, %v668_v25 }
 0x2af   : > { %v4912_v42 = vpack.c.bf16 %v1008_v37, %v1007_v36  ;;  %v657_v37 = vadd.f32 %v4879_v58, %v4887_v62 }
 0x2b0   : > { %v4917_v45 = vpack.c.bf16 %v1006_v39, %v1005_v38  ;;  %v3715_v46 = vpop.f32.mrb[16].mxu1  ;;  %v4975_v38 = vpack.c.bf16 %v667_v28, %v667_v28 }
 0x2b1   : > { %v979_v47 = vadd.f32 %v3715_v46, %v4887_v62  ;;  %v970_v48 = vpop.f32.mrb[17].mxu1  ;;  %3730 = vmatmul.mubr.msk.bf16.vlgmr.msra.gmra.mrb[24].mxu1 %vm478_vm0, %v4910_v41  ;;  %v1167_v49 = vsel %vm478_vm0, %v4912_v42, 0  ;;  %v669_v58 = vmax.f32 %v657_v37, 0.0 }
 0x2b2   : > { %v971_v50 = vadd.f32 %v4887_v62, %v970_v48  ;;  %v3716_v51 = vpop.f32.mrb[18].mxu1  ;;  %3724 = vmatmul.mubr.msk.bf16.vlgmr.msra.gmra.mrb[24].mxu0 %vm478_vm0, %v4915_v44  ;;  %3740 = vmatpush3.bf16.xpose.msra.mxu1 %v1167_v49  ;;  %v1121_v52 = vsel %vm478_vm0, %v4917_v45, 0 }
 0x2b3   : > { %v982_v24 = vadd.f32 %v3716_v51, %v4887_v62  ;;  %v973_v55 = vpop.f32.mrb[19].mxu1  ;;  %3734 = vmatpush3.bf16.xpose.msra.mxu0 %v1121_v52  ;;  %3741 = vmatprep.mubr.msk.bf16.mxu1 %vm4436_vm1, %v4435_v54  ;;  %v1011_v63 = vmax.f32 %v979_v47, 0.0  ;;  %v4995_v46 = vpack.c.bf16 %v669_v58, %v669_v58 }
 0x2b4   : > { %v974_v57 = vadd.f32 %v4887_v62, %v973_v55  ;;  %3735 = vmatprep.mubr.msk.bf16.mxu0 %vm4436_vm1, %v4435_v54  ;;  %3751 = vmatprep.subr.bf16.mxu1 %v4435_v54  ;;  %v1009_v1 = vmax.f32 %v971_v50, 0.0 }
 0x2b5   : > { %v1012_v0 = vmax.f32 %v982_v24, 0.0  ;;  %3745 = vmatprep.subr.bf16.mxu0 %v4435_v54 }
 0x2b6   : > { %v1010_v2 = vmax.f32 %v974_v57, 0.0 }
 0x2b7   : > { %v4941_v5 = vpack.c.bf16 %v1012_v0, %v1011_v63 }
 0x2b8   : > { %v4947_v8 = vpack.c.bf16 %v1010_v2, %v1009_v1  ;;  %v3719_v9 = vpop.f32.mrb[20].mxu1 }
 0x2b9   : > { %v995_v10 = vadd.f32 %v3719_v9, %v4887_v62  ;;  %v986_v11 = vpop.f32.mrb[21].mxu1  ;;  %3742 = vmatmul.mubr.msk.bf16.vlgmr.msra.gmra.mrb[28].mxu1 %vm478_vm0, %v4937_v3  ;;  %v1259_v13 = vsel %vm478_vm0, %v4941_v5, 0 }
 0x2ba   : > { %v987_v61 = vadd.f32 %v4887_v62, %v986_v11  ;;  %v3720_v23 = vpop.f32.mrb[22].mxu1  ;;  %3736 = vmatmul.mubr.msk.bf16.vlgmr.msra.gmra.mrb[28].mxu0 %vm478_vm0, %v4943_v6  ;;  %3752 = vmatpush3.bf16.xpose.msra.mxu1 %v1259_v13  ;;  %v1213_v59 = vsel %vm478_vm0, %v4947_v8, 0 }
 0x2bb   : > { %v998_v26 = vadd.f32 %v3720_v23, %v4887_v62  ;;  %v989_v27 = vpop.f32.mrb[23].mxu1  ;;  %3746 = vmatpush3.bf16.xpose.msra.mxu0 %v1213_v59  ;;  %3753 = vmatprep.mubr.msk.bf16.mxu1 %vm4436_vm1, %v4435_v54  ;;  %v1015_v30 = vmax.f32 %v995_v10, 0.0 }
 0x2bc   : > { %v990_v29 = vadd.f32 %v4887_v62, %v989_v27  ;;  %3747 = vmatprep.mubr.msk.bf16.mxu0 %vm4436_vm1, %v4435_v54  ;;  %3763 = vmatprep.subr.bf16.mxu1 %v4435_v54  ;;  %v1013_v32 = vmax.f32 %v987_v61, 0.0  ;;  %v4993_v62 = vpack.c.bf16 %v670_v43, %v670_v43 }
 0x2bd   : > { %v1016_v31 = vmax.f32 %v998_v26, 0.0  ;;  %3757 = vmatprep.subr.bf16.mxu0 %v4435_v54 }
 0x2be   : > { %v1014_v33 = vmax.f32 %v990_v29, 0.0 }
 0x2bf   : > { %v4971_v36 = vpack.c.bf16 %v1016_v31, %v1015_v30 }
 0x2c0   : > { %v4977_v39 = vpack.c.bf16 %v1014_v33, %v1013_v32 }
 0x2c1   : > { %3754 = vmatmul.mubr.msk.bf16.vlgmr.msra.gmra.mrb[32].mxu1 %vm478_vm0, %v4969_v35  ;;  %v1351_v40 = vsel %vm478_vm0, %v4971_v36, 0 }
 0x2c2   : > { %3748 = vmatmul.mubr.msk.bf16.vlgmr.msra.gmra.mrb[32].mxu0 %vm478_vm0, %v4975_v38  ;;  %3764 = vmatpush3.bf16.xpose.msra.mxu1 %v1351_v40  ;;  %v1305_v60 = vsel %vm478_vm0, %v4977_v39, 0 }
 0x2c3   : > { %3758 = vmatpush3.bf16.xpose.msra.mxu0 %v1305_v60  ;;  %3765 = vmatprep.mubr.msk.bf16.mxu1 %vm4436_vm1, %v4435_v54 }
 0x2c4   : > { %3759 = vmatprep.mubr.msk.bf16.mxu0 %vm4436_vm1, %v4435_v54  ;;  %3769 = vmatprep.subr.bf16.mxu0 %v4435_v54 }
 0x2c5   : > { %3775 = vmatprep.subr.bf16.mxu1 %v4435_v54 }
 0x2c9   : > { %3766 = vmatmul.mubr.msk.bf16.vlgmr.msra.gmra.mrb[36].mxu1 %vm478_vm0, %v4993_v62 }
 0x2ca   : > { %3760 = vmatmul.mubr.msk.bf16.vlgmr.msra.gmra.mrb[36].mxu0 %vm478_vm0, %v4995_v46  ;;  %3776 = vmatpush3.bf16.msra.mxu1 %v4801_v15 }
 0x2cb   : > { %3770 = vmatpush3.bf16.msra.mxu0 %v4795_v14  ;;  %3771 = vmatprep.mubr.msk.bf16.mxu0 %vm4436_vm1, %v4435_v54 }
 0x2cc   : > { %3777 = vmatprep.mubr.msk.bf16.mxu1 %vm4436_vm1, %v4435_v54  ;;  %3781 = vmatprep.subr.bf16.mxu0 %v4435_v54 }
 0x2cd   : > { %3787 = vmatprep.subr.bf16.mxu1 %v4435_v54 }
 0x384   : > { %v1111_v47 = vpop.f32.mrb[24].mxu1 }
 0x385   : > { %v1065_v48 = vpop.f32.mrb[24].mxu0  ;;  %v3731_v49 = vpop.f32.mrb[25].mxu1  ;;  %v1397_v24 = vsel %vm1393_vm2, %v1111_v47, -inf }
 0x386   : > { %v3725_v50 = vpop.f32.mrb[25].mxu0  ;;  %v1114_v51 = vpop.f32.mrb[26].mxu1  ;;  %v1394_v15 = vsel %vm1393_vm2, %v1065_v48, -inf }
 0x387   : > { %v3732_v52 = vpop.f32.mrb[27].mxu1  ;;  %1395 = vmax.xlane.f32.xlu0 %v1394_v15  ;;  %v1068_v14 = vpop.f32.mrb[26].mxu0 }
 0x388   : > { %v3726_v53 = vpop.f32.mrb[27].mxu0 }
 0x38b   : > { %1398 = vmax.xlane.f32.xlu0 %v1397_v24 }
 0x38c   : > { %v1203_v55 = vpop.f32.mrb[28].mxu1 }
 0x38d   : > { %v1157_v56 = vpop.f32.mrb[28].mxu0  ;;  %v3743_v57 = vpop.f32.mrb[29].mxu1  ;;  %v1403_v9 = vsel %vm1393_vm2, %v1203_v55, -inf }
 0x38e   : > { %v3737_v63 = vpop.f32.mrb[29].mxu0  ;;  %v1206_v0 = vpop.f32.mrb[30].mxu1  ;;  %v1400_v1 = vsel %vm1393_vm2, %v1157_v56, -inf }
 0x38f   : > { %v3744_v2 = vpop.f32.mrb[31].mxu1  ;;  %1401 = vmax.xlane.f32.xlu1 %v1400_v1  ;;  %v1160_v4 = vpop.f32.mrb[30].mxu0 }
 0x390   : > { %v3738_v7 = vpop.f32.mrb[31].mxu0 }
 0x393   : > { %1404 = vmax.xlane.f32.xlu1 %v1403_v9 }
 0x394   : > { %v1295_v10 = vpop.f32.mrb[32].mxu1 }
 0x395   : > { %v1249_v11 = vpop.f32.mrb[32].mxu0  ;;  %v3755_v13 = vpop.f32.mrb[33].mxu1  ;;  %v1409_v61 = vsel %vm1393_vm2, %v1295_v10, -inf }
 0x396   : > { %v3749_v23 = vpop.f32.mrb[33].mxu0  ;;  %v1298_v59 = vpop.f32.mrb[34].mxu1  ;;  %v1406_v25 = vsel %vm1393_vm2, %v1249_v11, -inf }
 0x397   : > { %v3756_v26 = vpop.f32.mrb[35].mxu1  ;;  %1410 = vmax.xlane.f32.xlu1 %v1409_v61  ;;  %1407 = vmax.xlane.f32.xlu0 %v1406_v25  ;;  %v1252_v27 = vpop.f32.mrb[34].mxu0 }
 0x398   : > { %v3750_v28 = vpop.f32.mrb[35].mxu0 }
 0x39c   : > { %v1387_v29 = vpop.f32.mrb[36].mxu1 }
 0x39d   : > { %v1341_v30 = vpop.f32.mrb[36].mxu0  ;;  %v3767_v31 = vpop.f32.mrb[37].mxu1  ;;  %v1415_v32 = vsel %vm1393_vm2, %v1387_v29, -inf }
 0x39e   : > { %v1390_v33 = vpop.f32.mrb[38].mxu1  ;;  %1416 = vmax.xlane.f32.xlu1 %v1415_v32  ;;  %v3761_v34 = vpop.f32.mrb[37].mxu0  ;;  %v1412_v37 = vsel %vm1393_vm2, %v1341_v30, -inf }
 0x39f   : > { %v3768_v40 = vpop.f32.mrb[39].mxu1  ;;  %1413 = vmax.xlane.f32.xlu0 %v1412_v37  ;;  %v1344_v60 = vpop.f32.mrb[38].mxu0 }
 0x3a0   : > { %v3762_v43 = vpop.f32.mrb[39].mxu0 }
 0x414   : > { %v1396_v58 = vpop.xlane.xlu0 %1395 }
 0x415   : > { %v1418_v49 = vsub.f32 %v1065_v48, %v1396_v58 }
 0x417   : > { %v1426_v50 = vmul.f32 1.442695, %v1418_v49 }
 0x418   : > { %v1399_v51 = vpop.xlane.xlu0 %1398 }
 0x419   : > { %4035 = vpow2.f32 %v1426_v50  ;;  %v1419_v15 = vsub.f32 %v1111_v47, %v1399_v51 }
 0x41b   : > { %v1428_v52 = vmul.f32 1.442695, %v1419_v15 }
 0x41c   : > { %v1402_v14 = vpop.xlane.xlu1 %1401 }
 0x41d   : > { %4037 = vpow2.f32 %v1428_v52  ;;  %v1420_v53 = vsub.f32 %v1157_v56, %v1402_v14 }
 0x41f   : > { %v1430_v24 = vmul.f32 1.442695, %v1420_v53 }
 0x420   : > { %v1405_v57 = vpop.xlane.xlu1 %1404 }
 0x421   : > { %4039 = vpow2.f32 %v1430_v24  ;;  %v1421_v63 = vsub.f32 %v1203_v55, %v1405_v57 }
 0x423   : > { %v4036_v0 = vpop.eup %4035  ;;  %v1432_v1 = vmul.f32 1.442695, %v1421_v63 }
 0x424   : > { %v1411_v2 = vpop.xlane.xlu1 %1410  ;;  %v1408_v4 = vpop.xlane.xlu0 %1407  ;;  %v1442_v7 = vsel %vm1393_vm2, %v4036_v0, 0.0 }
 0x425   : > { %4041 = vpow2.f32 %v1432_v1  ;;  %v1423_v48 = vsub.f32 %v1295_v10, %v1411_v2  ;;  %v1422_v9 = vsub.f32 %v1249_v11, %v1408_v4  ;;  %1443 = vadd.xlane.f32.xlu0 %v1442_v7 }
 0x427   : > { %v4038_v13 = vpop.eup %4037  ;;  %v1436_v47 = vmul.f32 1.442695, %v1423_v48  ;;  %v1434_v61 = vmul.f32 1.442695, %v1422_v9 }
 0x428   : > { %v1445_v23 = vsel %vm1393_vm2, %v4038_v13, 0.0 }
 0x429   : > { %4043 = vpow2.f32 %v1436_v47  ;;  %1446 = vadd.xlane.f32.xlu1 %v1445_v23 }
 0x42a   : > { %4045 = vpow2.f32 %v1434_v61 }
 0x42b   : > { %v4040_v56 = vpop.eup %4039  ;;  %v1417_v55 = vpop.xlane.xlu1 %1416 }
 0x42c   : > { %v1425_v59 = vsub.f32 %v1387_v29, %v1417_v55  ;;  %v1414_v25 = vpop.xlane.xlu0 %1413  ;;  %v1448_v26 = vsel %vm1393_vm2, %v4040_v56, 0.0 }
 0x42d   : > { %v1424_v27 = vsub.f32 %v1341_v30, %v1414_v25  ;;  %1449 = vadd.xlane.f32.xlu0 %v1448_v26 }
 0x42e   : > { %v1440_v28 = vmul.f32 1.442695, %v1425_v59 }
 0x42f   : > { %v4042_v10 = vpop.eup %4041  ;;  %v1438_v11 = vmul.f32 1.442695, %v1424_v27 }
 0x430   : > { %4047 = vpow2.f32 %v1440_v28  ;;  %v1451_v31 = vsel %vm1393_vm2, %v4042_v10, 0.0 }
 0x431   : > { %4049 = vpow2.f32 %v1438_v11  ;;  %1452 = vadd.xlane.f32.xlu1 %v1451_v31 }
 0x433   : > { %v4044_v32 = vpop.eup %4043 }
 0x434   : > { %v4046_v33 = vpop.eup %4045  ;;  %v1457_v34 = vsel %vm1393_vm2, %v4044_v32, 0.0 }
 0x435   : > { %1458 = vadd.xlane.f32.xlu1 %v1457_v34  ;;  %v1454_v29 = vsel %vm1393_vm2, %v4046_v33, 0.0 }
 0x436   : > { %1455 = vadd.xlane.f32.xlu0 %v1454_v29 }
 0x43a   : > { %v5023_v37 = vpop.eup %4047 }
 0x43b   : > { %v4050_v30 = vpop.eup %4049  ;;  %v1463_v40 = vsel %vm1393_vm2, %v5023_v37, 0.0 }
 0x43c   : > { %1464 = vadd.xlane.f32.xlu1 %v1463_v40  ;;  %v1460_v60 = vsel %vm1393_vm2, %v4050_v30, 0.0 }
 0x43d   : > { %1461 = vadd.xlane.f32.xlu0 %v1460_v60 }
 0x4b2   : > { %v1444_v43 = vpop.xlane.xlu0 %1443 }
 0x4b3   : > { %4051 = vrcp.f32 %v1444_v43 }
 0x4b6   : > { %v1447_v58 = vpop.xlane.xlu1 %1446 }
 0x4b7   : > { %4053 = vrcp.f32 %v1447_v58 }
 0x4ba   : > { %v1450_v49 = vpop.xlane.xlu0 %1449 }
 0x4bb   : > { %4055 = vrcp.f32 %v1450_v49 }
 0x4bd   : > { %v4052_v50 = vpop.eup %4051 }
 0x4be   : > { %v1474_v51 = vmul.f32 %v4052_v50, %v4036_v0  ;;  %v1453_v15 = vpop.xlane.xlu1 %1452 }
 0x4bf   : > { %4057 = vrcp.f32 %v1453_v15 }
 0x4c0   : > { %v1482_v52 = vpack.c.bf16 %v1474_v51, %v1474_v51 }
 0x4c1   : > { %v4054_v14 = vpop.eup %4053 }
 0x4c2   : > { %v1475_v53 = vmul.f32 %v4054_v14, %v4038_v13  ;;  %v1459_v24 = vpop.xlane.xlu1 %1458  ;;  %3772 = vmatmul.mubr.msk.bf16.vlgmr.msra.gmra.mrb[40].mxu0 %vm1393_vm2, %v1482_v52 }
 0x4c3   : > { %4059 = vrcp.f32 %v1459_v24  ;;  %v1456_v57 = vpop.xlane.xlu0 %1455  ;;  %3782 = vmatpush3.bf16.msra.mxu0 %v4804_v16  ;;  %3783 = vmatprep.mubr.msk.bf16.mxu0 %vm4436_vm1, %v4435_v54 }
 0x4c4   : > { %4061 = vrcp.f32 %v1456_v57  ;;  %v1483_v63 = vpack.c.bf16 %v1475_v53, %v1475_v53  ;;  %3793 = vmatprep.subr.bf16.mxu0 %v4435_v54 }
 0x4c5   : > { %v4056_v0 = vpop.eup %4055 }
 0x4c6   : > { %v1476_v1 = vmul.f32 %v4056_v0, %v4040_v56  ;;  %3778 = vmatmul.mubr.msk.bf16.vlgmr.msra.gmra.mrb[40].mxu1 %vm1393_vm2, %v1483_v63 }
 0x4c7   : > { %3788 = vmatpush3.bf16.msra.mxu1 %v4811_v17  ;;  %3789 = vmatprep.mubr.msk.bf16.mxu1 %vm4436_vm1, %v4435_v54 }
 0x4c8   : > { %v1484_v2 = vpack.c.bf16 %v1476_v1, %v1476_v1  ;;  %3799 = vmatprep.subr.bf16.mxu1 %v4435_v54 }
 0x4c9   : > { %v4058_v16 = vpop.eup %4057  ;;  %v1465_v4 = vpop.xlane.xlu1 %1464 }
 0x4ca   : > { %v1477_v7 = vmul.f32 %v4058_v16, %v4042_v10  ;;  %4063 = vrcp.f32 %v1465_v4  ;;  %3784 = vmatmul.mubr.msk.bf16.vlgmr.msra.gmra.mrb[44].mxu0 %vm1393_vm2, %v1484_v2  ;;  %v1462_v48 = vpop.xlane.xlu0 %1461 }
 0x4cb   : > { %4065 = vrcp.f32 %v1462_v48  ;;  %3794 = vmatpush3.bf16.msra.mxu0 %v4814_v18  ;;  %3795 = vmatprep.mubr.msk.bf16.mxu0 %vm4436_vm1, %v4435_v54  ;;  %v4438_v48 = vmov 1934713408  }
 0x4cc   : > { %v1485_v17 = vpack.c.bf16 %v1477_v7, %v1477_v7  ;;  %3805 = vmatprep.subr.bf16.mxu0 %v4435_v54 }
 0x4cd   : > { %v4060_v9 = vpop.eup %4059 }
 0x4ce   : > { %v4062_v13 = vpop.eup %4061  ;;  %3790 = vmatmul.mubr.msk.bf16.vlgmr.msra.gmra.mrb[44].mxu1 %vm1393_vm2, %v1485_v17  ;;  %v1479_v61 = vmul.f32 %v4060_v9, %v4044_v32  ;;  %v1909_v17 = vunpack.c.l.s4 %v4438_v48 }
 0x4cf   : > { %v1478_v47 = vmul.f32 %v4062_v13, %v4046_v33  ;;  %3800 = vmatpush3.bf16.msra.mxu1 %v4821_v19  ;;  %3801 = vmatprep.mubr.msk.bf16.mxu1 %vm4436_vm1, %v4435_v54 }
 0x4d0   : > { %3811 = vmatprep.subr.bf16.mxu1 %v4435_v54  ;;  %v1487_v56 = vpack.c.bf16 %v1479_v61, %v1479_v61 }
 0x4d1   : > { %v1486_v18 = vpack.c.bf16 %v1478_v47, %v1478_v47 }
 0x4d3   : > { %3796 = vmatmul.mubr.msk.bf16.vlgmr.msra.gmra.mrb[48].mxu0 %vm1393_vm2, %v1486_v18 }
 0x4d4   : > { %v4064_v23 = vpop.eup %4063  ;;  %3806 = vmatpush3.bf16.msra.mxu0 %v4824_v20  ;;  %3807 = vmatprep.mubr.msk.bf16.mxu0 %vm4436_vm1, %v4435_v54  ;;  %v1026_v20 = vsel %vm478_vm0, %v4915_v44, 0  ;;  %v1118_v44 = vsel %vm478_vm0, %v4943_v6, 0 }
 0x4d5   : > { %v4066_v55 = vpop.eup %4065  ;;  %3817 = vmatprep.subr.bf16.mxu0 %v4435_v54  ;;  %v1481_v59 = vmul.f32 %v4064_v23, %v5023_v37  ;;  %v1910_v23 = vunpack.c.0.s8 %v1909_v17 }
 0x4d6   : > { %v1480_v19 = vmul.f32 %v4066_v55, %v4050_v30  ;;  %3802 = vmatmul.mubr.msk.bf16.vlgmr.msra.gmra.mrb[48].mxu1 %vm1393_vm2, %v1487_v56 }
 0x4d7   : > { %3812 = vmatpush3.bf16.msra.mxu1 %v4831_v21  ;;  %3813 = vmatprep.mubr.msk.bf16.mxu1 %vm4436_vm1, %v4435_v54  ;;  %v1489_v26 = vpack.c.bf16 %v1481_v59, %v1481_v59  ;;  %v1072_v21 = vsel %vm478_vm0, %v4910_v41, 0  ;;  %v1164_v41 = vsel %vm478_vm0, %v4937_v3, 0 }
 0x4d8   : > { %v1488_v25 = vpack.c.bf16 %v1480_v19, %v1480_v19  ;;  %3823 = vmatprep.subr.bf16.mxu1 %v4435_v54 }
 0x4db   : > { %3808 = vmatmul.mubr.msk.bf16.vlgmr.msra.gmra.mrb[52].mxu0 %vm1393_vm2, %v1488_v25 }
 0x4dc   : > { %3819 = vmatprep.mubr.msk.bf16.mxu0 %vm4436_vm1, %v4435_v54 }
 0x4dd   : > { %3818 = vmatpush3.bf16.xpose.msra.mxu0 %v1026_v20 }
 0x4de   : > { %3814 = vmatmul.mubr.msk.bf16.vlgmr.msra.gmra.mrb[52].mxu1 %vm1393_vm2, %v1489_v26  ;;  %3829 = vmatprep.subr.bf16.mxu0 %v4435_v54 }
 0x4df   : > { %3825 = vmatprep.mubr.msk.bf16.mxu1 %vm4436_vm1, %v4435_v54 }
 0x4e0   : > { %3824 = vmatpush3.bf16.xpose.msra.mxu1 %v1072_v21 }
 0x4e1   : > { %3835 = vmatprep.subr.bf16.mxu1 %v4435_v54 }
 0x4e4   : > { %3820 = vmatmul.mubr.msk.bf16.vlgmr.msra.gmra.mrb[56].mxu0 %vm478_vm0, %v4897_v22  ;;  %v1210_v22 = vsel %vm478_vm0, %v4975_v38, 0 }
 0x4e5   : > { %3830 = vmatpush3.bf16.xpose.msra.mxu0 %v1118_v44  ;;  %3831 = vmatprep.mubr.msk.bf16.mxu0 %vm4436_vm1, %v4435_v54 }
 0x4e6   : > { %3841 = vmatprep.subr.bf16.mxu0 %v4435_v54 }
 0x4e7   : > { %3826 = vmatmul.mubr.msk.bf16.vlgmr.msra.gmra.mrb[56].mxu1 %vm478_vm0, %v4894_v12  ;;  %v1256_v12 = vsel %vm478_vm0, %v4969_v35, 0  ;;  %v4437_v35 = vmov 1983009808  }
 0x4e8   : > { %3836 = vmatpush3.bf16.xpose.msra.mxu1 %v1164_v41  ;;  %3837 = vmatprep.mubr.msk.bf16.mxu1 %vm4436_vm1, %v4435_v54  ;;  %v1845_v38 = vunpack.c.l.s4 %v4437_v35 }
 0x4e9   : > { %3847 = vmatprep.subr.bf16.mxu1 %v4435_v54 }
 0x4ea   : > { %v1846_v10 = vunpack.c.0.s8 %v1845_v38 }
 0x4ec   : > { %3832 = vmatmul.mubr.msk.bf16.vlgmr.msra.gmra.mrb[60].mxu0 %vm478_vm0, %v4917_v45  ;;  %v1302_v45 = vsel %vm478_vm0, %v4995_v46, 0 }
 0x4ed   : > { %3842 = vmatpush3.bf16.xpose.msra.mxu0 %v1210_v22  ;;  %3843 = vmatprep.mubr.msk.bf16.mxu0 %vm4436_vm1, %v4435_v54 }
 0x4ee   : > { %3853 = vmatprep.subr.bf16.mxu0 %v4435_v54 }
 0x4ef   : > { %3838 = vmatmul.mubr.msk.bf16.vlgmr.msra.gmra.mrb[60].mxu1 %vm478_vm0, %v4912_v42  ;;  %v1348_v42 = vsel %vm478_vm0, %v4993_v62, 0  ;;  %v1847_v62 = vlaneseq }
 0x4f0   : > { %3848 = vmatpush3.bf16.xpose.msra.mxu1 %v1256_v12  ;;  %3849 = vmatprep.mubr.msk.bf16.mxu1 %vm4436_vm1, %v4435_v54 }
 0x4f1   : > { %3859 = vmatprep.subr.bf16.mxu1 %v4435_v54  ;;  %v1848_v11 = vshrl.u32 %v1847_v62, 7 }
 0x4f3   : > { %v5121_v29 = vsub.s32 %v1846_v10, %v1848_v11  ;;  %v5127_v21 = vsub.s32 %v1910_v23, %v1848_v11 }
 0x4f4   : > { %3844 = vmatmul.mubr.msk.bf16.vlgmr.msra.gmra.mrb[64].mxu0 %vm478_vm0, %v4947_v8 }
 0x4f5   : > { %3854 = vmatpush3.bf16.xpose.msra.mxu0 %v1302_v45  ;;  %3855 = vmatprep.mubr.msk.bf16.mxu0 %vm4436_vm1, %v4435_v54 }
 0x4f6   : > { %3865 = vmatprep.subr.bf16.mxu0 %v4435_v54 }
 0x4f7   : > { %3850 = vmatmul.mubr.msk.bf16.vlgmr.msra.gmra.mrb[64].mxu1 %vm478_vm0, %v4941_v5 }
 0x4f8   : > { %3860 = vmatpush3.bf16.xpose.msra.mxu1 %v1348_v42  ;;  %3861 = vmatprep.mubr.msk.bf16.mxu1 %vm4436_vm1, %v4435_v54 }
 0x4f9   : > { %3871 = vmatprep.subr.bf16.mxu1 %v4435_v54 }
 0x4fc   : > { %3856 = vmatmul.mubr.msk.bf16.vlgmr.msra.gmra.mrb[68].mxu0 %vm478_vm0, %v4977_v39 }
 0x4fd   : > { %3867 = vmatprep.mubr.msk.bf16.mxu0 %vm4436_vm1, %v4435_v54 }
 0x4ff   : > { %3862 = vmatmul.mubr.msk.bf16.vlgmr.msra.gmra.mrb[68].mxu1 %vm478_vm0, %v4971_v36 }
 0x500   : > { %3873 = vmatprep.mubr.msk.bf16.mxu1 %vm4436_vm1, %v4435_v54 }
 0x595   : > { %v1528_v3 = vpop.f32.mrb[40].mxu0 }
 0x596   : > { %v3773_v5 = vpop.f32.mrb[41].mxu0 }
 0x597   : > { %v1531_v6 = vpop.f32.mrb[42].mxu0 }
 0x598   : > { %v3774_v8 = vpop.f32.mrb[43].mxu0 }
 0x599   : > { %v1572_v46 = vpop.f32.mrb[40].mxu1 }
 0x59a   : > { %v3779_v27 = vpop.f32.mrb[41].mxu1 }
 0x59b   : > { %v1575_v28 = vpop.f32.mrb[42].mxu1 }
 0x59c   : > { %v3780_v39 = vpop.f32.mrb[43].mxu1 }
 0x59d   : > { %v1616_v31 = vpop.f32.mrb[44].mxu0 }
 0x59e   : > { %v1842_v32 = vcombine.low %v1528_v3, %v1616_v31  ;;  %v1843_v33 = vcombine.high %v1528_v3, %v1616_v31  ;;  %v3785_v36 = vpop.f32.mrb[45].mxu0 }
 0x59f   : > { %v1619_v34 = vpop.f32.mrb[46].mxu0 }
 0x5a0   : > { %v3786_v37 = vpop.f32.mrb[47].mxu0  ;;  %v1850_v49 = vrot.slane %v1842_v32, %v5121_v29  ;;  %v1857_v50 = vrot.slane %v1843_v33, %v5121_v29 }
 0x5a1   : > { %v1660_v30 = vpop.f32.mrb[44].mxu1 }
 0x5a2   : > { %v1858_v40 = vcombine.low %v1572_v46, %v1660_v30  ;;  %v1859_v60 = vcombine.high %v1572_v46, %v1660_v30  ;;  %v3791_v43 = vpop.f32.mrb[45].mxu1 }
 0x5a3   : > { %v1663_v58 = vpop.f32.mrb[46].mxu1 }
 0x5a4   : > { %v1866_v51 = vrot.slane %v1858_v40, %v5121_v29  ;;  %v1873_v15 = vrot.slane %v1859_v60, %v5121_v29  ;;  %v3792_v52 = vpop.f32.mrb[47].mxu1 }
 0x5a6   : > { %v1906_v14 = vcombine.low %v1850_v49, %v1866_v51  ;;  %v1907_v53 = vcombine.high %v1850_v49, %v1866_v51  ;;  %v1922_v24 = vcombine.low %v1857_v50, %v1873_v15  ;;  %v1923_v57 = vcombine.high %v1857_v50, %v1873_v15  ;;  %v1704_v63 = vpop.f32.mrb[48].mxu0 }
 0x5a7   : > { %v3797_v0 = vpop.f32.mrb[49].mxu0 }
 0x5a8   : > { %v1707_v1 = vpop.f32.mrb[50].mxu0  ;;  %v5136_v35 = vrot.slane %v1922_v24, %v5127_v21  ;;  %v5139_v38 = vrot.slane %v1906_v14, %v5127_v21  ;;  %v5148_v28 = vrot.slane %v1923_v57, %v5127_v21  ;;  %v5156_v11 = vrot.slane %v1907_v53, %v5127_v21 }
 0x5a9   : > { %v3798_v2 = vpop.f32.mrb[51].mxu0  ;;  %v1748_v16 = vpop.f32.mrb[48].mxu1 }
 0x5aa   : > { %v3803_v4 = vpop.f32.mrb[49].mxu1 }
 0x5ab   : > { %v1751_v7 = vpop.f32.mrb[50].mxu1 }
 0x5ac   : > { %v3804_v9 = vpop.f32.mrb[51].mxu1 }
 0x5ae   : > { %v1792_v13 = vpop.f32.mrb[52].mxu0 }
 0x5af   : > { %v1874_v47 = vcombine.low %v1704_v63, %v1792_v13  ;;  %v1875_v61 = vcombine.high %v1704_v63, %v1792_v13  ;;  %v3809_v18 = vpop.f32.mrb[53].mxu0 }
 0x5b0   : > { %v1795_v56 = vpop.f32.mrb[54].mxu0 }
 0x5b1   : > { %v3810_v55 = vpop.f32.mrb[55].mxu0  ;;  %v1836_v19 = vpop.f32.mrb[52].mxu1  ;;  %v1882_v44 = vrot.slane %v1874_v47, %v5121_v29  ;;  %v1889_v41 = vrot.slane %v1875_v61, %v5121_v29 }
 0x5b2   : > { %v1890_v59 = vcombine.low %v1748_v16, %v1836_v19  ;;  %v1891_v25 = vcombine.high %v1748_v16, %v1836_v19  ;;  %v3815_v20 = vpop.f32.mrb[53].mxu1 }
 0x5b3   : > { %v1839_v26 = vpop.f32.mrb[54].mxu1 }
 0x5b4   : > { %v1898_v22 = vrot.slane %v1890_v59, %v5121_v29  ;;  %v1905_v12 = vrot.slane %v1891_v25, %v5121_v29  ;;  %v3816_v45 = vpop.f32.mrb[55].mxu1 }
 0x5b6   : > { %v1938_v42 = vcombine.low %v1882_v44, %v1898_v22  ;;  %v1939_v3 = vcombine.high %v1882_v44, %v1898_v22  ;;  %v1954_v5 = vcombine.low %v1889_v41, %v1905_v12  ;;  %v1955_v6 = vcombine.high %v1889_v41, %v1905_v12 }
 0x5b7   : > { %v5133_v8 = vpop.f32.mrb[56].mxu0 }
 0x5b8   : > { %v3821_v62 = vpop.f32.mrb[57].mxu0  ;;  %v5142_v46 = vrot.slane %v1954_v5, %v5127_v21  ;;  %v5145_v27 = vrot.slane %v1938_v42, %v5127_v21  ;;  %v5151_v39 = vrot.slane %v1955_v6, %v5127_v21  ;;  %v5159_v31 = vrot.slane %v1939_v3, %v5127_v21 }
 0x5b9   : > { %v5153_v10 = vpop.f32.mrb[58].mxu0  ;;  %v2341_v53 = vsel %vm2340_vm3, %v5133_v8, -inf }
 0x5ba   : > { %v3822_v32 = vpop.f32.mrb[59].mxu0  ;;  %v5161_v33 = vpop.f32.mrb[56].mxu1  ;;  %v1975_v36 = vcombine.high %v5136_v35, %v5142_v46  ;;  %v1971_v34 = vcombine.high %v5139_v38, %v5145_v27  ;;  %v1976_v37 = vcombine.low %v5148_v28, %v5151_v39  ;;  %v1972_v60 = vcombine.low %v5156_v11, %v5159_v31 }
 0x5bb   : > { %v3827_v30 = vpop.f32.mrb[57].mxu1  ;;  %v2347_v40 = vsel %vm2340_vm3, %v5161_v33, -inf  ;;  %v1977_v43 = vcombine.high %v5148_v28, %v5151_v39  ;;  %v1973_v58 = vcombine.high %v5156_v11, %v5159_v31  ;;  %v1970_v50 = vcombine.low %v5139_v38, %v5145_v27 }
 0x5bc   : > { %v5177_v49 = vpop.f32.mrb[58].mxu1  ;;  %2348 = vmax.xlane.f32.xlu0 %v2347_v40  ;;  %v1974_v51 = vcombine.low %v5136_v35, %v5142_v46  ;;  %v2344_v63 = vsel %vm2340_vm3, %v5153_v10, -inf }
 0x5bd   : > { %v3828_v15 = vpop.f32.mrb[59].mxu1  ;;  %v2350_v52 = vsel %vm2340_vm3, %v5177_v49, -inf }
 0x5be   : > { %2351 = vmax.xlane.f32.xlu1 %v2350_v52 }
 0x5bf   : > { %v5185_v14 = vpop.f32.mrb[60].mxu0 }
 0x5c0   : > { %v3833_v24 = vpop.f32.mrb[61].mxu0  ;;  %2342 = vmax.xlane.f32.xlu0 %v2341_v53  ;;  %v2353_v9 = vsel %vm2340_vm3, %v5185_v14, -inf }
 0x5c1   : > { %v5189_v57 = vpop.f32.mrb[62].mxu0 }
 0x5c2   : > { %v3834_v0 = vpop.f32.mrb[63].mxu0  ;;  %v5193_v1 = vpop.f32.mrb[60].mxu1  ;;  %2345 = vmax.xlane.f32.xlu1 %v2344_v63  ;;  %v2356_v61 = vsel %vm2340_vm3, %v5189_v57, -inf }
 0x5c3   : > { %v3839_v2 = vpop.f32.mrb[61].mxu1  ;;  %v2359_v16 = vsel %vm2340_vm3, %v5193_v1, -inf }
 0x5c4   : > { %v5197_v4 = vpop.f32.mrb[62].mxu1  ;;  %2360 = vmax.xlane.f32.xlu0 %v2359_v16 }
 0x5c5   : > { %v3840_v7 = vpop.f32.mrb[63].mxu1  ;;  %v2362_v48 = vsel %vm2340_vm3, %v5197_v4, -inf }
 0x5c6   : > { %2363 = vmax.xlane.f32.xlu1 %v2362_v48 }
 0x5c7   : > { %v5201_v17 = vpop.f32.mrb[64].mxu0 }
 0x5c8   : > { %v3845_v13 = vpop.f32.mrb[65].mxu0  ;;  %2354 = vmax.xlane.f32.xlu0 %v2353_v9  ;;  %v2365_v26 = vsel %vm2340_vm3, %v5201_v17, -inf }
 0x5c9   : > { %v5205_v47 = vpop.f32.mrb[66].mxu0 }
 0x5ca   : > { %v3846_v18 = vpop.f32.mrb[67].mxu0  ;;  %v5209_v23 = vpop.f32.mrb[64].mxu1  ;;  %2357 = vmax.xlane.f32.xlu1 %v2356_v61  ;;  %v2368_v22 = vsel %vm2340_vm3, %v5205_v47, -inf }
 0x5cb   : > { %v3851_v56 = vpop.f32.mrb[65].mxu1  ;;  %v2371_v55 = vsel %vm2340_vm3, %v5209_v23, -inf }
 0x5cc   : > { %v5213_v19 = vpop.f32.mrb[66].mxu1  ;;  %2372 = vmax.xlane.f32.xlu0 %v2371_v55 }
 0x5cd   : > { %v3852_v59 = vpop.f32.mrb[67].mxu1  ;;  %v2374_v25 = vsel %vm2340_vm3, %v5213_v19, -inf }
 0x5ce   : > { %2375 = vmax.xlane.f32.xlu1 %v2374_v25 }
 0x5cf   : > { %v5217_v20 = vpop.f32.mrb[68].mxu0 }
 0x5d0   : > { %v3857_v44 = vpop.f32.mrb[69].mxu0  ;;  %2366 = vmax.xlane.f32.xlu0 %v2365_v26  ;;  %v2377_v3 = vsel %vm2340_vm3, %v5217_v20, -inf }
 0x5d1   : > { %v5221_v41 = vpop.f32.mrb[70].mxu0 }
 0x5d2   : > { %v3858_v12 = vpop.f32.mrb[71].mxu0  ;;  %v5225_v45 = vpop.f32.mrb[68].mxu1  ;;  %2369 = vmax.xlane.f32.xlu1 %v2368_v22  ;;  %v2380_v62 = vsel %vm2340_vm3, %v5221_v41, -inf }
 0x5d3   : > { %v3863_v42 = vpop.f32.mrb[69].mxu1  ;;  %v2383_v32 = vsel %vm2340_vm3, %v5225_v45, -inf }
 0x5d4   : > { %v5229_v5 = vpop.f32.mrb[70].mxu1  ;;  %2378 = vmax.xlane.f32.xlu0 %v2377_v3 }
 0x5d5   : > { %v3864_v6 = vpop.f32.mrb[71].mxu1  ;;  %v2386_v30 = vsel %vm2340_vm3, %v5229_v5, -inf }
 0x5d6   : > { %2381 = vmax.xlane.f32.xlu1 %v2380_v62 }
 0x5d8   : > { %2384 = vmax.xlane.f32.xlu0 %v2383_v32 }
 0x5da   : > { %2387 = vmax.xlane.f32.xlu1 %v2386_v30 }
 0x649   : > { %v2349_v40 = vpop.xlane.xlu0 %2348 }
 0x64a   : > { %v2391_v15 = vsub.f32 %v5161_v33, %v2349_v40 }
 0x64b   : > { %v2352_v52 = vpop.xlane.xlu1 %2351 }
 0x64c   : > { %v2409_v53 = vmul.f32 1.442695, %v2391_v15  ;;  %v2392_v24 = vsub.f32 %v5177_v49, %v2352_v52 }
 0x64d   : > { %v2343_v63 = vpop.xlane.xlu0 %2342 }
 0x64e   : > { %4067 = vpow2.f32 %v2409_v53  ;;  %v2411_v0 = vmul.f32 1.442695, %v2392_v24  ;;  %v2389_v2 = vsub.f32 %v5133_v8, %v2343_v63 }
 0x64f   : > { %v2346_v16 = vpop.xlane.xlu1 %2345 }
 0x650   : > { %4069 = vpow2.f32 %v2411_v0  ;;  %v2405_v7 = vmul.f32 1.442695, %v2389_v2  ;;  %v2390_v48 = vsub.f32 %v5153_v10, %v2346_v16 }
 0x651   : > { %v2361_v9 = vpop.xlane.xlu0 %2360 }
 0x652   : > { %4071 = vpow2.f32 %v2405_v7  ;;  %v2407_v13 = vmul.f32 1.442695, %v2390_v48  ;;  %v2395_v61 = vsub.f32 %v5193_v1, %v2361_v9 }
 0x653   : > { %v2364_v33 = vpop.xlane.xlu1 %2363 }
 0x654   : > { %4073 = vpow2.f32 %v2407_v13  ;;  %v2417_v18 = vmul.f32 1.442695, %v2395_v61  ;;  %v2396_v49 = vsub.f32 %v5197_v4, %v2364_v33 }
 0x655   : > { %v2355_v56 = vpop.xlane.xlu0 %2354 }
 0x656   : > { %4075 = vpow2.f32 %v2417_v18  ;;  %v2419_v55 = vmul.f32 1.442695, %v2396_v49  ;;  %v2393_v8 = vsub.f32 %v5185_v14, %v2355_v56 }
 0x657   : > { %v2358_v59 = vpop.xlane.xlu1 %2357 }
 0x658   : > { %v5244_v25 = vpop.eup %4067  ;;  %4077 = vpow2.f32 %v2419_v55  ;;  %v2413_v10 = vmul.f32 1.442695, %v2393_v8  ;;  %v2394_v26 = vsub.f32 %v5189_v57, %v2358_v59 }
 0x659   : > { %v2373_v44 = vpop.xlane.xlu0 %2372  ;;  %v2443_v1 = vsel %vm2340_vm3, %v5244_v25, 0.0 }
 0x65a   : > { %v5249_v22 = vpop.eup %4069  ;;  %4079 = vpow2.f32 %v2413_v10  ;;  %v2415_v4 = vmul.f32 1.442695, %v2394_v26  ;;  %v2399_v12 = vsub.f32 %v5209_v23, %v2373_v44  ;;  %2444 = vadd.xlane.f32.xlu0 %v2443_v1 }
 0x65b   : > { %v2376_v42 = vpop.xlane.xlu1 %2375  ;;  %v2446_v14 = vsel %vm2340_vm3, %v5249_v22, 0.0 }
 0x65c   : > { %v5254_v3 = vpop.eup %4071  ;;  %4081 = vpow2.f32 %v2415_v4  ;;  %v2425_v6 = vmul.f32 1.442695, %v2399_v12  ;;  %v2400_v57 = vsub.f32 %v5213_v19, %v2376_v42  ;;  %2447 = vadd.xlane.f32.xlu1 %v2446_v14 }
 0x65d   : > { %v2367_v62 = vpop.xlane.xlu0 %2366  ;;  %v2437_v32 = vsel %vm2340_vm3, %v5254_v3, 0.0 }
 0x65e   : > { %v5259_v30 = vpop.eup %4073  ;;  %4083 = vpow2.f32 %v2425_v6  ;;  %v2427_v23 = vmul.f32 1.442695, %v2400_v57  ;;  %v2397_v40 = vsub.f32 %v5201_v17, %v2367_v62  ;;  %2438 = vadd.xlane.f32.xlu0 %v2437_v32 }
 0x65f   : > { %v2370_v15 = vpop.xlane.xlu1 %2369  ;;  %v2440_v52 = vsel %vm2340_vm3, %v5259_v30, 0.0 }
 0x660   : > { %v5264_v53 = vpop.eup %4075  ;;  %4085 = vpow2.f32 %v2427_v23  ;;  %v2421_v19 = vmul.f32 1.442695, %v2397_v40  ;;  %v2398_v24 = vsub.f32 %v5205_v47, %v2370_v15  ;;  %2441 = vadd.xlane.f32.xlu1 %v2440_v52  ;;  %v4131_v40 = vld [vmem:[%s4757_s18 + $0x4] sm:$0xf] }
 0x661   : > { %v2379_v63 = vpop.xlane.xlu0 %2378  ;;  %v2455_v0 = vsel %vm2340_vm3, %v5264_v53, 0.0  ;;  %v2577_v15 = vsel %vm2528_vm4, %v4131_v40, 0 }
 0x662   : > { %v5269_v2 = vpop.eup %4077  ;;  %4087 = vpow2.f32 %v2421_v19  ;;  %v2423_v17 = vmul.f32 1.442695, %v2398_v24  ;;  %v2401_v16 = vsub.f32 %v5217_v20, %v2379_v63  ;;  %2456 = vadd.xlane.f32.xlu0 %v2455_v0  ;;  %3872 = vmatpush3.bf16.msra.mxu1 %v2577_v15  ;;  %v4132_v19 = vld [vmem:[%s4757_s18] sm:$0xf] }
 0x663   : > { %v2382_v7 = vpop.xlane.xlu1 %2381  ;;  %v2458_v48 = vsel %vm2340_vm3, %v5269_v2, 0.0  ;;  %3883 = vmatprep.subr.bf16.mxu1 %v4435_v54  ;;  %v2530_v24 = vsel %vm2528_vm4, %v4132_v19, 0 }
 0x664   : > { %v5274_v9 = vpop.eup %4079  ;;  %4089 = vpow2.f32 %v2423_v17  ;;  %v2429_v47 = vmul.f32 1.442695, %v2401_v16  ;;  %v2402_v13 = vsub.f32 %v5221_v41, %v2382_v7  ;;  %2459 = vadd.xlane.f32.xlu1 %v2458_v48  ;;  %3866 = vmatpush3.bf16.msra.mxu0 %v2530_v24  ;;  %v4133_v48 = vld [vmem:[%s4757_s18 + $0xc] sm:$0xf] }
 0x665   : > { %v2385_v61 = vpop.xlane.xlu0 %2384  ;;  %v2449_v33 = vsel %vm2340_vm3, %v5274_v9, 0.0  ;;  %3877 = vmatprep.subr.bf16.mxu0 %v4435_v54 }
 0x666   : > { %v5279_v18 = vpop.eup %4081  ;;  %4091 = vpow2.f32 %v2429_v47  ;;  %v2431_v20 = vmul.f32 1.442695, %v2402_v13  ;;  %v2403_v49 = vsub.f32 %v5225_v45, %v2385_v61  ;;  %2450 = vadd.xlane.f32.xlu0 %v2449_v33  ;;  %v2671_v47 = vsel %vm2528_vm4, %v4133_v48, 0 }
 0x667   : > { %v2388_v56 = vpop.xlane.xlu1 %2387  ;;  %v2452_v55 = vsel %vm2340_vm3, %v5279_v18, 0.0 }
 0x668   : > { %v5284_v8 = vpop.eup %4083  ;;  %4093 = vpow2.f32 %v2431_v20  ;;  %v2433_v41 = vmul.f32 1.442695, %v2403_v49  ;;  %v2404_v59 = vsub.f32 %v5229_v5, %v2388_v56  ;;  %2453 = vadd.xlane.f32.xlu1 %v2452_v55  ;;  %v4134_v56 = vld [vmem:[%s4757_s18 + $0x8] sm:$0xf] }
 0x669   : > { %v2467_v10 = vsel %vm2340_vm3, %v5284_v8, 0.0  ;;  %v2624_v55 = vsel %vm2528_vm4, %v4134_v56, 0 }
 0x66a   : > { %v5289_v26 = vpop.eup %4085  ;;  %4095 = vpow2.f32 %v2433_v41  ;;  %v2435_v44 = vmul.f32 1.442695, %v2404_v59  ;;  %2468 = vadd.xlane.f32.xlu0 %v2467_v10 }
 0x66b   : > { %v2470_v45 = vsel %vm2340_vm3, %v5289_v26, 0.0 }
 0x66c   : > { %v5293_v1 = vpop.eup %4087  ;;  %4097 = vpow2.f32 %v2435_v44  ;;  %2471 = vadd.xlane.f32.xlu1 %v2470_v45 }
 0x66d   : > { %v2461_v4 = vsel %vm2340_vm3, %v5293_v1, 0.0 }
 0x66e   : > { %v5297_v5 = vpop.eup %4089  ;;  %2462 = vadd.xlane.f32.xlu0 %v2461_v4  ;;  %v4135_v4 = vld [vmem:[%s4757_s18 + $0x14] sm:$0xf] }
 0x66f   : > { %v2464_v12 = vsel %vm2340_vm3, %v5297_v5, 0.0 }
 0x670   : > { %v5301_v42 = vpop.eup %4091  ;;  %2465 = vadd.xlane.f32.xlu1 %v2464_v12  ;;  %v2765_v12 = vsel %vm2528_vm4, %v4135_v4, 0 }
 0x671   : > { %v2473_v14 = vsel %vm2340_vm3, %v5301_v42, 0.0 }
 0x672   : > { %v5305_v6 = vpop.eup %4093  ;;  %2474 = vadd.xlane.f32.xlu0 %v2473_v14 }
 0x673   : > { %v2476_v57 = vsel %vm2340_vm3, %v5305_v6, 0.0 }
 0x674   : > { %v5309_v62 = vpop.eup %4095  ;;  %2477 = vadd.xlane.f32.xlu1 %v2476_v57 }
 0x675   : > { %v2479_v32 = vsel %vm2340_vm3, %v5309_v62, 0.0 }
 0x676   : > { %v5313_v23 = vpop.eup %4097  ;;  %2480 = vadd.xlane.f32.xlu0 %v2479_v32 }
 0x677   : > { %v2482_v52 = vsel %vm2340_vm3, %v5313_v23, 0.0 }
 0x678   : > { %2483 = vadd.xlane.f32.xlu1 %v2482_v52  ;;  %v4136_v52 = vld [vmem:[%s4757_s18 + $0x10] sm:$0xf] }
 0x679   : > { %v2718_v19 = vsel %vm2528_vm4, %v4136_v52, 0 }
 0x689   : > { %1991 = vrot.lane.b32.xlu1 %v1975_v36, %s4439_s30 }
 0x68c   : > { %1979 = vrot.lane.b32.xlu0 %v1971_v34, %s4439_s30 }
 0x68d   : > { %1995 = vrot.lane.b32.xlu1 %v1976_v37, %s4440_s17 }
 0x690   : > { %1983 = vrot.lane.b32.xlu0 %v1972_v60, %s4440_s17 }
 0x691   : > { %1999 = vrot.lane.b32.xlu1 %v1977_v43, %s4441_s10 }
 0x694   : > { %1987 = vrot.lane.b32.xlu0 %v1973_v58, %s4441_s10 }
 0x6e7   : > { %v2445_v36 = vpop.xlane.xlu0 %2444 }
 0x6e8   : > { %4099 = vrcp.f32 %v2445_v36 }
 0x6e9   : > { %v2448_v34 = vpop.xlane.xlu1 %2447 }
 0x6ea   : > { %4101 = vrcp.f32 %v2448_v34 }
 0x6eb   : > { %v2439_v37 = vpop.xlane.xlu0 %2438 }
 0x6ec   : > { %4103 = vrcp.f32 %v2439_v37 }
 0x6ed   : > { %v2442_v63 = vpop.xlane.xlu1 %2441 }
 0x6ee   : > { %4105 = vrcp.f32 %v2442_v63 }
 0x6ef   : > { %v2457_v60 = vpop.xlane.xlu0 %2456 }
 0x6f0   : > { %4107 = vrcp.f32 %v2457_v60  ;;  %v4137_v60 = vld [vmem:[%s4757_s18 + $0x1c] sm:$0xf] }
 0x6f1   : > { %v2460_v0 = vpop.xlane.xlu1 %2459 }
 0x6f2   : > { %v4100_v17 = vpop.eup %4099  ;;  %4109 = vrcp.f32 %v2460_v0 }
 0x6f3   : > { %v2451_v28 = vpop.xlane.xlu0 %2450  ;;  %v2503_v11 = vmul.f32 %v4100_v17, %v5244_v25 }
 0x6f4   : > { %v4102_v39 = vpop.eup %4101  ;;  %4111 = vrcp.f32 %v2451_v28 }
 0x6f5   : > { %v2504_v31 = vmul.f32 %v4102_v39, %v5249_v22  ;;  %v2454_v43 = vpop.xlane.xlu1 %2453 }
 0x6f6   : > { %v4104_v58 = vpop.eup %4103  ;;  %4113 = vrcp.f32 %v2454_v43 }
 0x6f7   : > { %v2469_v16 = vpop.xlane.xlu0 %2468  ;;  %v2518_v7 = vpack.c.bf16 %v2504_v31, %v2503_v11  ;;  %v2501_v61 = vmul.f32 %v4104_v58, %v5254_v3  ;;  %v4138_v31 = vld [vmem:[%s4757_s18 + $0x18] sm:$0xf]  ;;  %s4442_s18 = smov [#allocation13]  }
 0x6f8   : > { %v4106_v13 = vpop.eup %4105  ;;  %4115 = vrcp.f32 %v2469_v16  ;;  %v2812_v43 = vsel %vm2528_vm4, %v4138_v31, 0  ;;  %s4315_s0 = sshll.u32 %s4442_s18, 4  ;;  %s4316_s0 = int_to_ptr.vmem [resolvable:$false] %s4315_s0 }
 0x6f9   : > { %v2502_v33 = vmul.f32 %v4106_v13, %v5259_v30  ;;  %3874 = vmatmul.mubr.msk.bf16.vlgmr.msra.gmra.mrb[72].mxu1 %vm2340_vm3, %v2518_v7  ;;  %v2472_v25 = vpop.xlane.xlu1 %2471  ;;  %s4317_s3 = scalar_lea.vmem %s4316_s0, 512  ;;  %p4318_p3 = scmp.lt.s32.totalorder %s3259_s8, %s4316_s0 }
 0x6fa   : > { %v4108_v20 = vpop.eup %4107  ;;  %4117 = vrcp.f32 %v2472_v25  ;;  %3884 = vmatpush3.bf16.msra.mxu1 %v2671_v47  ;;  %3885 = vmatprep.mubr.msk.bf16.mxu1 %vm4436_vm1, %v4435_v54  ;;  %p4319_p5 = scmp.lt.s32.totalorder %s4317_s3, %s4311_s13 }
 0x6fb   : > { %v2463_v22 = vpop.xlane.xlu0 %2462  ;;  %v2517_v49 = vpack.c.bf16 %v2502_v33, %v2501_v61  ;;  %3895 = vmatprep.subr.bf16.mxu1 %v4435_v54  ;;  %v2507_v30 = vmul.f32 %v4108_v20, %v5264_v53 }
 0x6fc   : > { %v4110_v3 = vpop.eup %4109  ;;  %4119 = vrcp.f32 %v2463_v22  ;;  %p4320_p9 = por %p4319_p5, %p4318_p3 }
 0x6fd   : > { %v2508_v41 = vmul.f32 %v4110_v3, %v5269_v2  ;;  %3868 = vmatmul.mubr.msk.bf16.vlgmr.msra.gmra.mrb[72].mxu0 %vm2340_vm3, %v2517_v49  ;;  %v2466_v59 = vpop.xlane.xlu1 %2465 }
 0x6fe   : > { %v4112_v10 = vpop.eup %4111  ;;  %4121 = vrcp.f32 %v2466_v59  ;;  %3878 = vmatpush3.bf16.msra.mxu0 %v2624_v55  ;;  %3879 = vmatprep.mubr.msk.bf16.mxu0 %vm4436_vm1, %v4435_v54  ;;  %p4321_p8 = pnand %p4320_p9, %p4314_p6 }
 0x6ff   : > { %v2475_v44 = vpop.xlane.xlu0 %2474  ;;  %v2520_v45 = vpack.c.bf16 %v2508_v41, %v2507_v30  ;;  %3889 = vmatprep.subr.bf16.mxu0 %v4435_v54  ;;  %v2505_v2 = vmul.f32 %v4112_v10, %v5274_v9 }
 0x700   : > { %v4114_v53 = vpop.eup %4113 }
 0x701   : > { %v2506_v14 = vmul.f32 %v4114_v53, %v5279_v18  ;;  %3886 = vmatmul.mubr.msk.bf16.vlgmr.msra.gmra.mrb[76].mxu1 %vm2340_vm3, %v2520_v45  ;;  %v2478_v57 = vpop.xlane.xlu1 %2477 }
 0x702   : > { %v4116_v32 = vpop.eup %4115  ;;  %4123 = vrcp.f32 %v2478_v57  ;;  %3896 = vmatpush3.bf16.msra.mxu1 %v2765_v12  ;;  %3897 = vmatprep.mubr.msk.bf16.mxu1 %vm4436_vm1, %v4435_v54 }
 0x703   : > { %4125 = vrcp.f32 %v2475_v44  ;;  %v2481_v40 = vpop.xlane.xlu0 %2480  ;;  %v2519_v15 = vpack.c.bf16 %v2506_v14, %v2505_v2  ;;  %3907 = vmatprep.subr.bf16.mxu1 %v4435_v54  ;;  %v2511_v18 = vmul.f32 %v4116_v32, %v5284_v8  ;;  %v2859_v8 = vsel %vm2528_vm4, %v4137_v60, 0 }
 0x704   : > { %v4118_v9 = vpop.eup %4117  ;;  %4127 = vrcp.f32 %v2481_v40 }
 0x705   : > { %v2512_v24 = vmul.f32 %v4118_v9, %v5289_v26  ;;  %3880 = vmatmul.mubr.msk.bf16.vlgmr.msra.gmra.mrb[76].mxu0 %vm2340_vm3, %v2519_v15  ;;  %v2484_v36 = vpop.xlane.xlu1 %2483 }
 0x706   : > { %v4120_v34 = vpop.eup %4119  ;;  %4129 = vrcp.f32 %v2484_v36  ;;  %3890 = vmatpush3.bf16.msra.mxu0 %v2718_v19  ;;  %3891 = vmatprep.mubr.msk.bf16.mxu0 %vm4436_vm1, %v4435_v54 }
 0x707   : > { %v1980_v37 = vpop.permute.xlu0 %1979  ;;  %v2522_v63 = vpack.c.bf16 %v2512_v24, %v2511_v18  ;;  %3901 = vmatprep.subr.bf16.mxu0 %v4435_v54  ;;  %v2509_v26 = vmul.f32 %v4120_v34, %v5293_v1 }
 0x708   : > { %v4122_v0 = vpop.eup %4121  ;;  %v2002_v7 = vsel %vm478_vm0, %v1970_v50, %v1980_v37 }
 0x709   : > { %v2510_v17 = vmul.f32 %v4122_v0, %v5297_v5  ;;  %3898 = vmatmul.mubr.msk.bf16.vlgmr.msra.gmra.mrb[80].mxu1 %vm2340_vm3, %v2522_v63  ;;  %v1992_v28 = vpop.permute.xlu1 %1991 }
 0x70a   : > { %3908 = vmatpush3.bf16.msra.mxu1 %v2859_v8  ;;  %3909 = vmatprep.mubr.msk.bf16.mxu1 %vm4436_vm1, %v4435_v54  ;;  %v2007_v33 = vsel %vm478_vm0, %v1974_v51, %v1992_v28 }
 0x70b   : > { %v1984_v39 = vpop.permute.xlu0 %1983  ;;  %v2521_v11 = vpack.c.bf16 %v2510_v17, %v2509_v26 }
 0x70c   : > { %v4124_v58 = vpop.eup %4123  ;;  %v2004_v47 = vsel %vm2003_vm5, %v2002_v7, %v1984_v39 }
 0x70d   : > { %v4126_v16 = vpop.eup %4125  ;;  %3892 = vmatmul.mubr.msk.bf16.vlgmr.msra.gmra.mrb[80].mxu0 %vm2340_vm3, %v2521_v11  ;;  %v1996_v1 = vpop.permute.xlu1 %1995  ;;  %v2514_v48 = vmul.f32 %v4124_v58, %v5305_v6 }
 0x70e   : > { %v4128_v5 = vpop.eup %4127  ;;  %3902 = vmatpush3.bf16.msra.mxu0 %v2812_v43  ;;  %3903 = vmatprep.mubr.msk.bf16.mxu0 %vm4436_vm1, %v4435_v54  ;;  %v2513_v38 = vmul.f32 %v4126_v16, %v5301_v42  ;;  %v2008_v54 = vsel %vm2003_vm5, %v2007_v33, %v1996_v1 }
 0x70f   : > { %v1988_v13 = vpop.permute.xlu0 %1987  ;;  %v2515_v27 = vmul.f32 %v4128_v5, %v5309_v62 }
 0x710   : > { %v4130_v61 = vpop.eup %4129  ;;  %v2006_v25 = vsel %vm2005_vm6, %v2004_v47, %v1988_v13  ;;  %v2523_v46 = vpack.c.bf16 %v2514_v48, %v2513_v38 }
 0x711   : > { %v2516_v50 = vmul.f32 %v4130_v61, %v5313_v23  ;;  %2010 = vst [vmem:[%s5409_s29] sm:$0xff] %v2006_v25  ;;  %v2000_v6 = vpop.permute.xlu1 %1999 }
 0x712   : > { %v2009_v35 = vsel %vm2005_vm6, %v2008_v54, %v2000_v6 }
 0x713   : > { %2011 = vst [vmem:[%s5409_s29 + $0x8] sm:$0xff] %v2009_v35  ;;  %v2524_v51 = vpack.c.bf16 %v2516_v50, %v2515_v27 }
 0x715   : > { %3904 = vmatmul.mubr.msk.bf16.vlgmr.msra.gmra.mrb[84].mxu0 %vm2340_vm3, %v2523_v46  ;;  %3910 = vmatmul.mubr.msk.bf16.vlgmr.msra.gmra.mrb[84].mxu1 %vm2340_vm3, %v2524_v51 }
 0x7cc   : > { %v2613_v42 = vpop.f32.mrb[72].mxu1 }
 0x7cd   : > { %v3875_v62 = vpop.f32.mrb[73].mxu1 }
 0x7ce   : > { %v2616_v23 = vpop.f32.mrb[74].mxu1 }
 0x7cf   : > { %v3876_v20 = vpop.f32.mrb[75].mxu1 }
 0x7d0   : > { %v2566_v22 = vpop.f32.mrb[72].mxu0 }
 0x7d1   : > { %v3869_v49 = vpop.f32.mrb[73].mxu0 }
 0x7d2   : > { %v2569_v56 = vpop.f32.mrb[74].mxu0 }
 0x7d3   : > { %v3870_v55 = vpop.f32.mrb[75].mxu0 }
 0x7d4   : > { %v2707_v3 = vpop.f32.mrb[76].mxu1 }
 0x7d5   : > { %v2918_v30 = vcombine.low %v2613_v42, %v2707_v3  ;;  %v2919_v41 = vcombine.high %v2613_v42, %v2707_v3  ;;  %v3887_v59 = vpop.f32.mrb[77].mxu1 }
 0x7d6   : > { %v2710_v10 = vpop.f32.mrb[78].mxu1 }
 0x7d7   : > { %v3054_v44 = vcombine.low %v2616_v23, %v2710_v10  ;;  %v3055_v45 = vcombine.high %v2616_v23, %v2710_v10  ;;  %v3888_v4 = vpop.f32.mrb[79].mxu1  ;;  %v2926_v57 = vrot.slane %v2918_v30, %v5121_v29  ;;  %v2933_v32 = vrot.slane %v2919_v41, %v5121_v29 }
 0x7d8   : > { %v2660_v12 = vpop.f32.mrb[76].mxu0 }
 0x7d9   : > { %v2902_v53 = vcombine.low %v2566_v22, %v2660_v12  ;;  %v2903_v2 = vcombine.high %v2566_v22, %v2660_v12  ;;  %v3881_v14 = vpop.f32.mrb[77].mxu0  ;;  %v3062_v8 = vrot.slane %v3054_v44, %v5121_v29  ;;  %v3069_v0 = vrot.slane %v3055_v45, %v5121_v29 }
 0x7da   : > { %v2663_v40 = vpop.f32.mrb[78].mxu0 }
 0x7db   : > { %v2910_v15 = vrot.slane %v2902_v53, %v5121_v29  ;;  %v2917_v52 = vrot.slane %v2903_v2, %v5121_v29  ;;  %v3038_v19 = vcombine.low %v2569_v56, %v2663_v40  ;;  %v3039_v9 = vcombine.high %v2569_v56, %v2663_v40  ;;  %v3882_v18 = vpop.f32.mrb[79].mxu0 }
 0x7dc   : > { %v2801_v24 = vpop.f32.mrb[80].mxu1 }
 0x7dd   : > { %v2966_v36 = vcombine.low %v2910_v15, %v2926_v57  ;;  %v2967_v34 = vcombine.high %v2910_v15, %v2926_v57  ;;  %v2982_v37 = vcombine.low %v2917_v52, %v2933_v32  ;;  %v2983_v63 = vcombine.high %v2917_v52, %v2933_v32  ;;  %v3899_v60 = vpop.f32.mrb[81].mxu1 }
 0x7de   : > { %v3046_v26 = vrot.slane %v3038_v19, %v5121_v29  ;;  %v3053_v17 = vrot.slane %v3039_v9, %v5121_v29  ;;  %v2804_v28 = vpop.f32.mrb[82].mxu1 }
 0x7df   : > { %v3900_v39 = vpop.f32.mrb[83].mxu1  ;;  %v5425_v13 = vrot.slane %v2967_v34, %v5127_v21  ;;  %v5428_v61 = vrot.slane %v2966_v36, %v5127_v21  ;;  %v5431_v33 = vrot.slane %v2982_v37, %v5127_v21  ;;  %v5434_v25 = vrot.slane %v2983_v63, %v5127_v21 }
 0x7e0   : > { %v3102_v11 = vcombine.low %v3046_v26, %v3062_v8  ;;  %v3103_v31 = vcombine.high %v3046_v26, %v3062_v8  ;;  %v3118_v43 = vcombine.low %v3053_v17, %v3069_v0  ;;  %v3119_v58 = vcombine.high %v3053_v17, %v3069_v0  ;;  %v2754_v16 = vpop.f32.mrb[80].mxu0 }
 0x7e1   : > { %v3893_v1 = vpop.f32.mrb[81].mxu0 }
 0x7e2   : > { %v2757_v5 = vpop.f32.mrb[82].mxu0  ;;  %v5437_v42 = vrot.slane %v3102_v11, %v5127_v21  ;;  %v5440_v62 = vrot.slane %v3103_v31, %v5127_v21  ;;  %v5443_v23 = vrot.slane %v3118_v43, %v5127_v21  ;;  %v5446_v20 = vrot.slane %v3119_v58, %v5127_v21 }
 0x7e3   : > { %v3894_v7 = vpop.f32.mrb[83].mxu0 }
 0x7e8   : > { %v2848_v48 = vpop.f32.mrb[84].mxu0  ;;  %v2895_v47 = vpop.f32.mrb[84].mxu1 }
 0x7e9   : > { %v2934_v38 = vcombine.low %v2754_v16, %v2848_v48  ;;  %v2935_v27 = vcombine.high %v2754_v16, %v2848_v48  ;;  %v2950_v50 = vcombine.low %v2801_v24, %v2895_v47  ;;  %v2951_v54 = vcombine.high %v2801_v24, %v2895_v47  ;;  %v3905_v6 = vpop.f32.mrb[85].mxu0  ;;  %v3911_v35 = vpop.f32.mrb[85].mxu1 }
 0x7ea   : > { %v2851_v46 = vpop.f32.mrb[86].mxu0  ;;  %v2898_v51 = vpop.f32.mrb[86].mxu1 }
 0x7eb   : > { %v2942_v22 = vrot.slane %v2934_v38, %v5121_v29  ;;  %v2949_v49 = vrot.slane %v2935_v27, %v5121_v29  ;;  %v2958_v56 = vrot.slane %v2950_v50, %v5121_v29  ;;  %v2965_v55 = vrot.slane %v2951_v54, %v5121_v29  ;;  %v3906_v3 = vpop.f32.mrb[87].mxu0  ;;  %v3912_v30 = vpop.f32.mrb[87].mxu1 }
 0x7ec   : > { %v3070_v41 = vcombine.low %v2757_v5, %v2851_v46  ;;  %v3071_v59 = vcombine.high %v2757_v5, %v2851_v46  ;;  %v3086_v10 = vcombine.low %v2804_v28, %v2898_v51  ;;  %v3087_v44 = vcombine.high %v2804_v28, %v2898_v51 }
 0x7ed   : > { %v2998_v45 = vcombine.low %v2942_v22, %v2958_v56  ;;  %v2999_v4 = vcombine.high %v2942_v22, %v2958_v56  ;;  %v3014_v12 = vcombine.low %v2949_v49, %v2965_v55  ;;  %v3015_v53 = vcombine.high %v2949_v49, %v2965_v55 }
 0x7ee   : > { %v3078_v2 = vrot.slane %v3070_v41, %v5121_v29  ;;  %v3085_v14 = vrot.slane %v3071_v59, %v5121_v29  ;;  %v3094_v57 = vrot.slane %v3086_v10, %v5121_v29  ;;  %v3101_v32 = vrot.slane %v3087_v44, %v5121_v29 }
 0x7ef   : > { %v3013_v40 = vrot.slane %v2999_v4, %v5127_v21  ;;  %v5458_v15 = vrot.slane %v2998_v45, %v5127_v21  ;;  %v5461_v52 = vrot.slane %v3014_v12, %v5127_v21  ;;  %v3029_v19 = vrot.slane %v3015_v53, %v5127_v21 }
 0x7f0   : > { %v3134_v9 = vcombine.low %v3078_v2, %v3094_v57  ;;  %v3135_v18 = vcombine.high %v3078_v2, %v3094_v57  ;;  %v3150_v24 = vcombine.low %v3085_v14, %v3101_v32  ;;  %v3151_v36 = vcombine.high %v3085_v14, %v3101_v32 }
 0x7f1   : > { %v3032_v34 = vcombine.low %v5425_v13, %v3013_v40  ;;  %v3031_v37 = vcombine.high %v5428_v61, %v5458_v15  ;;  %v3033_v29 = vcombine.high %v5425_v13, %v3013_v40  ;;  %v3035_v63 = vcombine.high %v5431_v33, %v5461_v52 }
 0x7f2   : > { %v3036_v60 = vcombine.low %v5434_v25, %v3029_v19  ;;  %v5472_v8 = vrot.slane %v3134_v9, %v5127_v21  ;;  %v3037_v0 = vcombine.high %v5434_v25, %v3029_v19  ;;  %v3149_v26 = vrot.slane %v3135_v18, %v5127_v21 }
 0x7f3   : > { %3179 = vrot.lane.b32.xlu0 %v3032_v34, %s4440_s17  ;;  %3175 = vrot.lane.b32.xlu1 %v3031_v37, %s4439_s30  ;;  %v5479_v17 = vrot.slane %v3150_v24, %v5127_v21  ;;  %v3165_v28 = vrot.slane %v3151_v36, %v5127_v21  ;;  %v3030_v39 = vcombine.low %v5428_v61, %v5458_v15 }
 0x7f4   : > { %v3167_v11 = vcombine.high %v5437_v42, %v5472_v8  ;;  %v3168_v31 = vcombine.low %v5440_v62, %v3149_v26  ;;  %v3169_v43 = vcombine.high %v5440_v62, %v3149_v26  ;;  %v3034_v58 = vcombine.low %v5431_v33, %v5461_v52 }
 0x7f5   : > { %v3171_v16 = vcombine.high %v5443_v23, %v5479_v17  ;;  %v3172_v21 = vcombine.low %v5446_v20, %v3165_v28  ;;  %v3173_v1 = vcombine.high %v5446_v20, %v3165_v28  ;;  %v3166_v5 = vcombine.low %v5437_v42, %v5472_v8 }
 0x7f6   : > { %v3170_v7 = vcombine.low %v5443_v23, %v5479_v17 }
 0x7f7   : > { %3183 = vrot.lane.b32.xlu0 %v3033_v29, %s4441_s10  ;;  %3187 = vrot.lane.b32.xlu1 %v3035_v63, %s4439_s30 }
 0x7fb   : > { %3191 = vrot.lane.b32.xlu1 %v3036_v60, %s4440_s17  ;;  %3199 = vrot.lane.b32.xlu0 %v3167_v11, %s4439_s30 }
 0x7ff   : > { %3195 = vrot.lane.b32.xlu1 %v3037_v0, %s4441_s10  ;;  %3203 = vrot.lane.b32.xlu0 %v3168_v31, %s4440_s17 }
 0x800   : > { %4324 = shalt.err (!%p4321_p8)
}
 0x801   : > { %s4325_s9 = scalar_lea.hbm %s5509_s19, 256  ;;  %s4329_s29 = scalar_lea.hbm %s5604_s6, 512 }
 0x802   : > { %p4326_p11 = scmp.ne.s32.totalorder %s5509_s19, %s4325_s9  ;;  %p4330_p1 = scmp.lt.u32.totalorder %s5509_s19, %s5604_s6 }
 0x803   : > { %p4331_p2 = scmp.lt.u32.totalorder %s4329_s29, %s4325_s9  ;;  %p4333_p0 = scmp.lt.u32.totalorder %s4325_s9, %s5509_s19 }
 0x804   : > { %p4327_p7 = pnand %p4326_p11, %p4650_p10 }
 0x805   : > { %p4332_p13 = por %p4331_p2, %p4330_p1 }
 0x806   : > { %p4328_p12 = pneg %p4327_p7 }
 0x807   : > { %p4334_p4 = por %p4333_p0, %p4332_p13 }
 0x809   : > { %p4335_p6 = pnand %p4334_p4, %p4328_p12 }
 0x80b   : > { %4338 = shalt.err (!%p4335_p6)
}
 0x80c   : > { %3933 = dma.vmem_to_hbm [thread:$0]  (%p4650_p10), %s3259_s8, 256, %s5509_s19, %s3239_s20   ;;  %3211 = vrot.lane.b32.xlu1 %v3171_v16, %s4439_s30  ;;  %3207 = vrot.lane.b32.xlu0 %v3169_v43, %s4441_s10 }
 0x80d   : > { %s402_s8 = scalar_lea.vmem [#allocation14], %s3450_s15  ;;  %s3560_s15 = sshll.u32 %s4505_s28, 9 }
 0x80e   : > { %s3272_s30 = sshll.u32 %s402_s8, 4  ;;  %s5553_s12 = scalar_lea.hbm %s5605_s7, %s3560_s15  ;;  %s5555_s30 = int_to_ptr.vmem [resolvable:$true] %s3272_s30 }
 0x80f   : > { %s3244_s28 = scalar_lea.sflag [#allocation15], %s4751_s4  ;;  %s4339_s19 = scalar_lea.vmem %s5555_s30, 512 }
 0x810   : > { %3215 = vrot.lane.b32.xlu1 %v3172_v21, %s4440_s17  ;;  %p4340_p3 = scmp.ne.s32.totalorder %s5555_s30, %s4339_s19  ;;  %s4443_s20 = smov [#allocation14]  }
 0x811   : > { %s4343_s13 = sshll.u32 %s4443_s20, 4  ;;  %s4344_s13 = int_to_ptr.vmem [resolvable:$false] %s4343_s13 }
 0x812   : > { %p4341_p5 = pnand %p4340_p3, %p4650_p10  ;;  %s4345_s18 = scalar_lea.vmem %s4344_s13, 1024 }
 0x813   : > { %p4346_p8 = scmp.lt.s32.totalorder %s5555_s30, %s4344_s13  ;;  %p4347_p11 = scmp.lt.s32.totalorder %s4345_s18, %s4339_s19 }
 0x814   : > { %3219 = vrot.lane.b32.xlu1 %v3173_v1, %s4441_s10  ;;  %p4342_p9 = pneg %p4341_p5 }
 0x815   : > { %p4348_p7 = por %p4347_p11, %p4346_p8 }
 0x817   : > { %p4349_p12 = pnand %p4348_p7, %p4342_p9 }
 0x865   : > { %v3180_v48 = vpop.permute.xlu0 %3179  ;;  %v3176_v47 = vpop.permute.xlu1 %3175 }
 0x866   : > { %v3222_v13 = vsel %vm478_vm0, %v3030_v39, %v3176_v47 }
 0x867   : > { %v3223_v33 = vsel %vm2003_vm5, %v3222_v13, %v3180_v48 }
 0x869   : > { %v3184_v61 = vpop.permute.xlu0 %3183  ;;  %v3188_v25 = vpop.permute.xlu1 %3187 }
 0x86a   : > { %v3224_v38 = vsel %vm2005_vm6, %v3223_v33, %v3184_v61  ;;  %v3225_v54 = vsel %vm478_vm0, %v3034_v58, %v3188_v25 }
 0x86b   : > { %3234 = vst [vmem:[%s402_s8] sm:$0xff] %v3224_v38 }
 0x86d   : > { %v3192_v27 = vpop.permute.xlu1 %3191  ;;  %v3200_v50 = vpop.permute.xlu0 %3199 }
 0x86e   : > { %v3226_v6 = vsel %vm2003_vm5, %v3225_v54, %v3192_v27  ;;  %v3228_v42 = vsel %vm478_vm0, %v3166_v5, %v3200_v50 }
 0x871   : > { %v3196_v35 = vpop.permute.xlu1 %3195  ;;  %v3204_v46 = vpop.permute.xlu0 %3203 }
 0x872   : > { %v3227_v51 = vsel %vm2005_vm6, %v3226_v6, %v3196_v35  ;;  %v3229_v62 = vsel %vm2003_vm5, %v3228_v42, %v3204_v46 }
 0x873   : > { %3235 = vst [vmem:[%s402_s8 + $0x8] sm:$0xff] %v3227_v51 }
 0x87e   : > { %v3212_v20 = vpop.permute.xlu1 %3211  ;;  %v3208_v22 = vpop.permute.xlu0 %3207 }
 0x87f   : > { %v3230_v49 = vsel %vm2005_vm6, %v3229_v62, %v3208_v22  ;;  %v3231_v55 = vsel %vm478_vm0, %v3170_v7, %v3212_v20 }
 0x880   : > { %3236 = vst [vmem:[%s402_s8 + $0x10] sm:$0xff] %v3230_v49 }
 0x882   : > { %v3216_v56 = vpop.permute.xlu1 %3215 }
 0x883   : > { %v3232_v3 = vsel %vm2003_vm5, %v3231_v55, %v3216_v56 }
 0x886   : > { %v3220_v30 = vpop.permute.xlu1 %3219 }
 0x887   : > { %v3233_v41 = vsel %vm2005_vm6, %v3232_v3, %v3220_v30 }
 0x888   : > { %3237 = vst [vmem:[%s402_s8 + $0x18] sm:$0xff] %v3233_v41 }
 0x889   : > { %4352 = shalt.err (!%p4349_p12)
}
 0x88a   : > { %s4353_s4 = scalar_lea.hbm %s5553_s12, 512  ;;  %s4357_s9 = scalar_lea.hbm %s5605_s7, 1024 }
 0x88b   : > { %p4354_p1 = scmp.ne.s32.totalorder %s5553_s12, %s4353_s4  ;;  %p4358_p0 = scmp.lt.u32.totalorder %s5553_s12, %s5605_s7 }
 0x88c   : > { %p4359_p4 = scmp.lt.u32.totalorder %s4357_s9, %s4353_s4  ;;  %p4361_p3 = scmp.lt.u32.totalorder %s4353_s4, %s5553_s12 }
 0x88d   : > { %p4355_p2 = pnand %p4354_p1, %p4650_p10 }
 0x88e   : > { %p4360_p6 = por %p4359_p4, %p4358_p0 }
 0x88f   : > { %p4356_p13 = pneg %p4355_p2 }
 0x890   : > { %p4362_p5 = por %p4361_p3, %p4360_p6 }
 0x892   : > { %p4363_p9 = pnand %p4362_p5, %p4356_p13 }
 0x894   : > { %4366 = shalt.err (!%p4363_p9)
}
 0x895   : > { %3934 = dma.vmem_to_hbm [thread:$0]  (%p4650_p10), %s5555_s30, 512, %s5553_s12, %s3244_s28  }
 0x896 PF: > { %s5642_s29 = sld [smem:[#allocation23_spill]]  ;;  %s3284_s14 = sand.u32 1, %s4413_s24  }
 0x897   : > { %p5644_p11 = scmp.ge.s32.totalorder %s4425_s27, 2  ;;  %s3285_s2 = scalar_lea.sflag [#allocation4], %s3284_s14 }
 0x89c   : > { %p5643_p8 = scmp.ne.s32.totalorder %s5642_s29, 0 }
 0x89e   : > { %p3958_p7 = pnand %p5644_p11, %p5643_p8 }
 0x8a0   : > { %4404 = dma.done.wait (!%p3958_p7), %s3285_s2, 256  }
 0x8a1   : > { %4406 = vsyncadd (!%p3958_p7), %s3285_s2, 4294967040  ;;  %s3294_s8 = scalar_lea.sflag [#allocation15], %s3284_s14 }
 0x8a2   : > { %4408 = dma.done.wait (!%p3958_p7), %s3294_s8, 512  }
 0x8a3   : > { %4410 = vsyncadd (!%p3958_p7), %s3294_s8, 4294966784  ;;  %p29_p10 = scmp.ge.s32.totalorder %s4640_s22, 4   ;;  %s5645_s24 = smov %s4417_s25 }
 0x8a4   : > { %s5646_s25 = smov %s4421_s26  ;;  %s5647_s26 = smov %s4656_s23 }
 0x8a5   : > { %s5648_s27 = smov %s4640_s22  ;;  %31 = sbr.rel (!%p29_p10) target bundleno = 16 (0x10), region = 135 }
 0x8ac   :  { %3299 = vsyncpa [#allocation3], 1 }
 0x8ad   :  { %3301 = vsyncpa [#allocation3 + $0x1], 1 }
 0x8ae   :  { %3302 = vsyncpa [#allocation6], 1 }
 0x8af   :  { %3304 = vsyncpa [#allocation6 + $0x1], 1 }
 0x8b0   :  { %3305 = vsyncpa [#allocation9], 1 }
 0x8b1   :  { %3306 = vsyncpa [#allocation12], 1 }
 0x8b2   :  { %3307 = vsyncpa [#allocation4], 1 }
 0x8b3   :  { %3309 = vsyncpa [#allocation4 + $0x1], 1 }
 0x8b4   :  { %3310 = vsyncpa [#allocation15], 1 }
 0x8b5   :  { %3312 = vsyncpa [#allocation15 + $0x1], 1 }

</bundles_post_ra>
